<compile_context>
chip_gen: v7x
topology: tpu7x:2x2x1
jax: 0.10.0
libtpu: 0.0.40
codegen_flags: <defaults>
</compile_context>

<pallas_src>
import jax
import jax.numpy as jnp
from jax import lax
from jax.experimental import pallas as pl
from jax.experimental.pallas import tpu as pltpu


def _round_up(x, m):
    return ((x + m - 1) // m) * m


# ----------------------------------------------------------------------------
# Kernel 1: 3x3 same-padding conv (per-branch feature extractor stand-in).
# Grid iterates over batch.  One im2col patch build + ONE MXU matmul
# (H*W, 9*Cin) @ (9*Cin, Cout), f32 accumulation, bf16 output.
# NOTE(perf): at real HRNet resolutions this should additionally be tiled over
# output rows (2-row halo) with a VMEM accumulator, and the output emitted
# lane-dense; both are follow-ups since the stand-in shapes are tiny.
# ----------------------------------------------------------------------------
def _conv3x3_kernel(x_ref, w_ref, b_ref, o_ref):
    # x_ref: (1, H+2, W+2, Cin) bf16   w_ref: (9*Cin, Cout) bf16
    # b_ref: (1, Cout) f32             o_ref: (1, H*W, Cout) bf16
    _, hp2, wp2, cin = x_ref.shape
    _, hw, cout = o_ref.shape
    H, W = hp2 - 2, wp2 - 2
    x = x_ref[0]                                            # (H+2, W+2, Cin)
    # im2col: 9 shifted views, each flattened over space, concatenated on the
    # contraction axis (tap-major, cin-minor) to match the offline weight
    # reshape (3,3,Cin,Cout) -> (9*Cin, Cout).
    taps = [x[kh:kh + H, kw:kw + W, :].reshape(hw, cin)
            for kh in range(3) for kw in range(3)]
    patch = jnp.concatenate(taps, axis=-1)                  # (H*W, 9*Cin)
    acc = jnp.dot(patch, w_ref[...], preferred_element_type=jnp.float32)
    o_ref[0] = (acc + b_ref[...]).astype(o_ref.dtype)


def conv3x3_same_flat(x_nhwc, w_hwio, b, *, out_dtype=jnp.bfloat16):
    """x_nhwc: (B,H,W,Cin), w_hwio: (3,3,Cin,Cout) bf16, b: (1,Cout) f32
    -> (B, H*W*Cout) flattened in (h, w, c) order, bf16."""
    B, H, W, Cin = x_nhwc.shape
    Cout = w_hwio.shape[-1]
    # bf16 input halves the conv input DMA; accumulation stays f32 in-kernel.
    x_pad = jnp.pad(x_nhwc, ((0, 0), (1, 1), (1, 1), (0, 0))).astype(jnp.bfloat16)
    w_flat = w_hwio.reshape(9 * Cin, Cout)
    out = pl.pallas_call(
        _conv3x3_kernel,
        out_shape=jax.ShapeDtypeStruct((B, H * W, Cout), out_dtype),
        grid_spec=pltpu.PrefetchScalarGridSpec(
            num_scalar_prefetch=0,
            grid=(B,),
            in_specs=[
                pl.BlockSpec((1, H + 2, W + 2, Cin), lambda b_: (b_, 0, 0, 0)),
                pl.BlockSpec((9 * Cin, Cout), lambda b_: (0, 0)),
                pl.BlockSpec((1, Cout), lambda b_: (0, 0)),
            ],
            out_specs=pl.BlockSpec((1, H * W, Cout), lambda b_: (b_, 0, 0)),
        ),
        compiler_params=pltpu.CompilerParams(
            dimension_semantics=("parallel",),
            vmem_limit_bytes=48 * 1024 * 1024,   # explicit (v5e default is 16 MiB)
        ),
    )(x_pad, w_flat, b)
    # (B, H*W, Cout) -> (B, F): contiguous reshape in the wrapper (no transpose).
    return out.reshape(B, H * W * Cout)


# ----------------------------------------------------------------------------
# Kernel 2a: fused ReLU + per-branch first-Linear partial sums.
# torch.cat((relu(rgb), relu(lwir)), dim=1).view(B,-1) @ W1 is realized as
#   relu(rgb_flat) @ W1_rgb  and  relu(lwir_flat) @ W1_lwir
# with W1 pre-split / row-permuted / F-padded / bf16-cast OFFLINE (no Hid
# padding: the stream stays (F, Hid)).  Grid = (branch, F-tile): the branch
# axis is "parallel" so v7x's two TensorCores each stream one W1 half; the
# F axis is the "arbitrary" reduction accumulated in a f32 VMEM scratch.
# Kernel 2b: tiny epilogue fusing  sum + b1 -> ReLU -> W2 -> +b2 -> softmax.
# NOTE(perf): W1 could additionally be stored int8 (v5e/v6e) or fp8 (v7x) with
# per-column scales to halve the dominant HBM stream again (follow-up).
# ----------------------------------------------------------------------------
def _hidden_partial_kernel(x_ref, w1_ref, part_ref, acc_ref):
    k = pl.program_id(1)

    @pl.when(k == 0)
    def _():
        acc_ref[...] = jnp.zeros_like(acc_ref)

    a = jnp.maximum(x_ref[0], 0.0)       # F.relu before the concat (fused)
    acc_ref[...] += jnp.dot(a, w1_ref[0], preferred_element_type=jnp.float32)

    @pl.when(k == pl.num_programs(1) - 1)
    def _():
        part_ref[0] = acc_ref[...]


def _classifier_epilogue_kernel(part_ref, b1_ref, w2_ref, b2_ref, o_ref):
    h = jnp.maximum(part_ref[0] + part_ref[1] + b1_ref[...], 0.0)
    logits = jnp.dot(h, w2_ref[...],
                     preferred_element_type=jnp.float32) + b2_ref[...]
    m = jnp.max(logits, axis=-1, keepdims=True)
    e = jnp.exp(logits - m)
    o_ref[...] = (e / jnp.sum(e, axis=-1, keepdims=True)).astype(o_ref.dtype)


def concat_classifier(rgb_flat, lwir_flat, w1_stacked, b1, w2, b2, *, tk):
    B, F = rgb_flat.shape
    _, F_pad, Hid = w1_stacked.shape     # W1 already F-padded (offline), Hid unpadded
    assert F_pad % tk == 0
    if F_pad != F:                       # only the small activations are padded per call
        pad = F_pad - F
        rgb_flat = jnp.pad(rgb_flat, ((0, 0), (0, pad)))
        lwir_flat = jnp.pad(lwir_flat, ((0, 0), (0, pad)))
    x_stacked = jnp.stack([rgb_flat, lwir_flat])            # (2, B, F_pad) bf16, tiny
    kt = F_pad // tk

    partial = pl.pallas_call(
        _hidden_partial_kernel,
        out_shape=jax.ShapeDtypeStruct((2, B, Hid), jnp.float32),
        grid_spec=pltpu.PrefetchScalarGridSpec(
            num_scalar_prefetch=0,
            grid=(2, kt),
            in_specs=[
                pl.BlockSpec((1, B, tk), lambda s, k: (s, 0, k)),
                pl.BlockSpec((1, tk, Hid), lambda s, k: (s, k, 0)),
            ],
            out_specs=pl.BlockSpec((1, B, Hid), lambda s, k: (s, 0, 0)),
            scratch_shapes=[pltpu.VMEM((B, Hid), jnp.float32)],
        ),
        compiler_params=pltpu.CompilerParams(
            dimension_semantics=("parallel", "arbitrary"),
            vmem_limit_bytes=48 * 1024 * 1024,
        ),
    )(x_stacked, w1_stacked)

    return pl.pallas_call(
        _classifier_epilogue_kernel,
        out_shape=jax.ShapeDtypeStruct((B, 2), jnp.float32),
        grid_spec=pltpu.PrefetchScalarGridSpec(
            num_scalar_prefetch=0,
            grid=(1,),
            in_specs=[
                pl.BlockSpec((2, B, Hid), lambda i: (0, 0, 0)),
                pl.BlockSpec((1, Hid), lambda i: (0, 0)),
                pl.BlockSpec((Hid, 2), lambda i: (0, 0)),
                pl.BlockSpec((1, 2), lambda i: (0, 0)),
            ],
            out_specs=pl.BlockSpec((B, 2), lambda i: (0, 0)),
        ),
    )(partial, b1, w2, b2)


# ----------------------------------------------------------------------------
# One-time parameter preparation (host-side): split W1 into branch halves,
# permute rows NCHW->NHWC flatten order, zero-pad the F axis ONCE to a
# multiple of the reduction tile tk, stack the two halves, cast to bf16.
# Hid is NOT padded (keeps the dominant HBM stream at its true width).
# ----------------------------------------------------------------------------
def prepare_params(params, *, image_hw, tk=16384):
    H, W = image_hw
    Cout = params["w_rgb"].shape[-1]
    F = Cout * H * W
    W1 = params["W1"]                    # (2*F, Hid)
    Hid = W1.shape[1]

    # Reduction tile: lane-dense multiple of 128, clamped to F.  Pick tk so the
    # double-buffered W1 block (2 * tk * Hid * 2B) fits the 48 MiB VMEM budget.
    tk = max(128, (tk // 128) * 128)
    tk = min(tk, _round_up(F, 128))
    F_pad = _round_up(F, tk)

    def perm(w):  # row c*H*W + h*W + w  ->  row (h*W + w)*Cout + c
        return w.reshape(Cout, H, W, Hid).transpose(1, 2, 0, 3).reshape(F, Hid)

    def pad_f(w):
        return jnp.pad(w, ((0, F_pad - F), (0, 0)))

    w1_stacked = jnp.stack(
        [pad_f(perm(W1[:F])), pad_f(perm(W1[F:]))]).astype(jnp.bfloat16)

    return {
        "w_rgb": params["w_rgb"].astype(jnp.bfloat16),
        "b_rgb": params["b_rgb"],
        "w_lwir": params["w_lwir"].astype(jnp.bfloat16),
        "b_lwir": params["b_lwir"],
        "w1": w1_stacked,                # (2, F_pad, Hid) bf16
        "b1": params["b1"],              # (1, Hid) f32
        "W2": params["W2"],              # (Hid, 2) f32
        "b2": params["b2"],
        "tk": tk,
    }


# ----------------------------------------------------------------------------
# ConcatNet forward (glue around the Pallas kernels).
# ----------------------------------------------------------------------------
def concatnet_forward(rgb_nchw, lwir_nchw, prepared):
    # NCHW (PyTorch) -> NHWC for the conv kernel (channels on lanes)
    rgb_nhwc = jnp.transpose(rgb_nchw, (0, 2, 3, 1))
    lwir_nhwc = jnp.transpose(lwir_nchw, (0, 2, 3, 1))

    rgb_flat = conv3x3_same_flat(rgb_nhwc, prepared["w_rgb"], prepared["b_rgb"])
    lwir_flat = conv3x3_same_flat(lwir_nhwc, prepared["w_lwir"], prepared["b_lwir"])

    return concat_classifier(rgb_flat, lwir_flat, prepared["w1"],
                             prepared["b1"], prepared["W2"], prepared["b2"],
                             tk=prepared["tk"])


# ----------------------------------------------------------------------------
# Pure-JAX reference (mirrors the kernel path's bf16 choices: conv inputs /
# weights / features / W1 in bf16, all accumulation in f32).
# ----------------------------------------------------------------------------
def reference_forward(rgb_nchw, lwir_nchw, params):
    def seg(x_nchw, w, b):
        x = jnp.transpose(x_nchw, (0, 2, 3, 1)).astype(jnp.bfloat16)
        y = lax.conv_general_dilated(
            x, w.astype(jnp.bfloat16), (1, 1), "SAME",
            dimension_numbers=("NHWC", "HWIO", "NHWC"),
            preferred_element_type=jnp.float32) + b.reshape(1, 1, 1, -1)
        return jnp.transpose(y, (0, 3, 1, 2)).astype(jnp.bfloat16)  # NCHW, bf16

    B = rgb_nchw.shape[0]
    r = seg(rgb_nchw, params["w_rgb"], params["b_rgb"])
    l = seg(lwir_nchw, params["w_lwir"], params["b_lwir"])
    cat = jnp.concatenate([jax.nn.relu(r), jax.nn.relu(l)], axis=1).reshape(B, -1)
    w1 = params["W1"].astype(jnp.bfloat16)
    h = jax.nn.relu(
        jnp.dot(cat, w1, preferred_element_type=jnp.float32) + params["b1"])
    logits = jnp.dot(h, params["W2"],
                     preferred_element_type=jnp.float32) + params["b2"]
    return jax.nn.softmax(logits, axis=-1)


if __name__ == "__main__":
    B, Cin, H, W = 2, 3, 16, 16      # small patches
    Cout, Hid = 8, 32                # per-branch feature channels, classifier hidden
    F = Cout * H * W                 # per-branch flattened features (663552 in the paper)

    key = jax.random.PRNGKey(0)
    ks = jax.random.split(key, 10)
    rgb = jax.random.normal(ks[0], (B, Cin, H, W), jnp.float32)
    lwir = jax.random.normal(ks[1], (B, Cin, H, W), jnp.float32)

    params = {
        "w_rgb":  jax.random.normal(ks[2], (3, 3, Cin, Cout), jnp.float32) * 0.1,
        "b_rgb":  jax.random.normal(ks[3], (1, Cout), jnp.float32) * 0.1,
        "w_lwir": jax.random.normal(ks[4], (3, 3, Cin, Cout), jnp.float32) * 0.1,
        "b_lwir": jax.random.normal(ks[5], (1, Cout), jnp.float32) * 0.1,
        "W1": jax.random.normal(ks[6], (2 * F, Hid), jnp.float32) / jnp.sqrt(2.0 * F),
        "b1": jax.random.normal(ks[7], (1, Hid), jnp.float32) * 0.1,
        "W2": jax.random.normal(ks[8], (Hid, 2), jnp.float32) / jnp.sqrt(1.0 * Hid),
        "b2": jax.random.normal(ks[9], (1, 2), jnp.float32) * 0.1,
    }

    # tk=512 at F=2048 -> 4 reduction steps per branch, exercising accumulation
    # and the (branch-parallel, F-arbitrary) grid.
    prepared = prepare_params(params, image_hw=(H, W), tk=512)
    out = concatnet_forward(rgb, lwir, prepared)
    out = jax.block_until_ready(out)

    ref = reference_forward(rgb, lwir, params)
    assert out.shape == (B, 2)
    assert jnp.allclose(out, ref, rtol=2e-3, atol=2e-3), (out, ref)
    print("KERNEL_OK")
</pallas_src>

<mosaic_0001>
module attributes {stable_mosaic.version = 11 : i64} {
  func.func @_conv3x3_kernel(%arg0: i32, %arg1: memref<1x18x18x3xbf16, #tpu.memory_space<vmem>>, %arg2: memref<27x8xbf16, #tpu.memory_space<vmem>>, %arg3: memref<1x8xf32, #tpu.memory_space<vmem>>, %arg4: memref<1x256x8xbf16, #tpu.memory_space<vmem>>) attributes {dimension_semantics = [#tpu.dimension_semantics<parallel>], iteration_bounds = array<i64: 2>, scalar_prefetch = 0 : i64, scratch_operands = 0 : i64, tpu.core_type = #tpu.core_type<tc>, window_params = [{transform_indices = @transform_0, window_bounds = array<i64: 1, 18, 18, 3>}, {pipeline_mode = #tpu.pipeline_mode<synchronous>, transform_indices = @transform_1, window_bounds = array<i64: 27, 8>}, {pipeline_mode = #tpu.pipeline_mode<synchronous>, transform_indices = @transform_2, window_bounds = array<i64: 1, 8>}, {transform_indices = @transform_3, window_bounds = array<i64: 1, 256, 8>}]} {
    %c0 = arith.constant 0 : index
    %c0_0 = arith.constant 0 : index
    %c0_1 = arith.constant 0 : index
    %c0_2 = arith.constant 0 : index
    %0 = vector.load %arg1[%c0, %c0_0, %c0_1, %c0_2] : memref<1x18x18x3xbf16, #tpu.memory_space<vmem>>, vector<1x18x18x3xbf16>
    %1 = vector.shape_cast %0 : vector<1x18x18x3xbf16> to vector<18x18x3xbf16>
    %2 = vector.extract_strided_slice %1 {offsets = [0, 0, 0], sizes = [16, 16, 3], strides = [1, 1, 1]} : vector<18x18x3xbf16> to vector<16x16x3xbf16>
    %3 = vector.shape_cast %2 : vector<16x16x3xbf16> to vector<256x3xbf16>
    %4 = vector.extract_strided_slice %1 {offsets = [0, 1, 0], sizes = [16, 16, 3], strides = [1, 1, 1]} : vector<18x18x3xbf16> to vector<16x16x3xbf16>
    %5 = vector.shape_cast %4 : vector<16x16x3xbf16> to vector<256x3xbf16>
    %6 = vector.extract_strided_slice %1 {offsets = [0, 2, 0], sizes = [16, 16, 3], strides = [1, 1, 1]} : vector<18x18x3xbf16> to vector<16x16x3xbf16>
    %7 = vector.shape_cast %6 : vector<16x16x3xbf16> to vector<256x3xbf16>
    %8 = vector.extract_strided_slice %1 {offsets = [1, 0, 0], sizes = [16, 16, 3], strides = [1, 1, 1]} : vector<18x18x3xbf16> to vector<16x16x3xbf16>
    %9 = vector.shape_cast %8 : vector<16x16x3xbf16> to vector<256x3xbf16>
    %10 = vector.extract_strided_slice %1 {offsets = [1, 1, 0], sizes = [16, 16, 3], strides = [1, 1, 1]} : vector<18x18x3xbf16> to vector<16x16x3xbf16>
    %11 = vector.shape_cast %10 : vector<16x16x3xbf16> to vector<256x3xbf16>
    %12 = vector.extract_strided_slice %1 {offsets = [1, 2, 0], sizes = [16, 16, 3], strides = [1, 1, 1]} : vector<18x18x3xbf16> to vector<16x16x3xbf16>
    %13 = vector.shape_cast %12 : vector<16x16x3xbf16> to vector<256x3xbf16>
    %14 = vector.extract_strided_slice %1 {offsets = [2, 0, 0], sizes = [16, 16, 3], strides = [1, 1, 1]} : vector<18x18x3xbf16> to vector<16x16x3xbf16>
    %15 = vector.shape_cast %14 : vector<16x16x3xbf16> to vector<256x3xbf16>
    %16 = vector.extract_strided_slice %1 {offsets = [2, 1, 0], sizes = [16, 16, 3], strides = [1, 1, 1]} : vector<18x18x3xbf16> to vector<16x16x3xbf16>
    %17 = vector.shape_cast %16 : vector<16x16x3xbf16> to vector<256x3xbf16>
    %18 = vector.extract_strided_slice %1 {offsets = [2, 2, 0], sizes = [16, 16, 3], strides = [1, 1, 1]} : vector<18x18x3xbf16> to vector<16x16x3xbf16>
    %19 = vector.shape_cast %18 : vector<16x16x3xbf16> to vector<256x3xbf16>
    %20 = tpu.concatenate %3, %5, %7, %9, %11, %13, %15, %17, %19 in 1 : vector<256x3xbf16>, vector<256x3xbf16>, vector<256x3xbf16>, vector<256x3xbf16>, vector<256x3xbf16>, vector<256x3xbf16>, vector<256x3xbf16>, vector<256x3xbf16>, vector<256x3xbf16> -> vector<256x27xbf16>
    %c0_3 = arith.constant 0 : index
    %c0_4 = arith.constant 0 : index
    %21 = vector.load %arg2[%c0_3, %c0_4] : memref<27x8xbf16, #tpu.memory_space<vmem>>, vector<27x8xbf16>
    %cst = arith.constant dense<0.000000e+00> : vector<256x8xf32>
    %22 = tpu.matmul %20, %21, %cst {dimension_numbers = #tpu.dot_dimension_numbers<[1], [0], [0], [1], [0, 0, 1, 1], [], []>} : vector<256x27xbf16>, vector<27x8xbf16>, vector<256x8xf32> -> vector<256x8xf32>
    %c0_5 = arith.constant 0 : index
    %c0_6 = arith.constant 0 : index
    %23 = vector.load %arg3[%c0_5, %c0_6] : memref<1x8xf32, #tpu.memory_space<vmem>>, vector<1x8xf32>
    %24 = vector.broadcast %23 : vector<1x8xf32> to vector<256x8xf32>
    %25 = arith.addf %22, %24 : vector<256x8xf32>
    %26 = arith.truncf %25 : vector<256x8xf32> to vector<256x8xbf16>
    %c0_7 = arith.constant 0 : index
    %c0_8 = arith.constant 0 : index
    %c0_9 = arith.constant 0 : index
    %27 = vector.load %arg4[%c0_7, %c0_8, %c0_9] : memref<1x256x8xbf16, #tpu.memory_space<vmem>>, vector<1x256x8xbf16>
    %28 = vector.shape_cast %27 : vector<1x256x8xbf16> to vector<256x8xbf16>
    %29 = vector.shape_cast %26 : vector<256x8xbf16> to vector<1x256x8xbf16>
    tpu.vector_store %arg4[%c0_7, %c0_8, %c0_9], %29 {strides = array<i32>} : memref<1x256x8xbf16, #tpu.memory_space<vmem>>, vector<1x256x8xbf16>,
    return
  }
  func.func @transform_0(%arg0: i32) -> (i32, i32, i32, i32) {
    %c0_i32 = arith.constant 0 : i32
    %c0_i32_0 = arith.constant 0 : i32
    %c0_i32_1 = arith.constant 0 : i32
    %c0_i32_2 = arith.constant 0 : i32
    return %arg0, %c0_i32, %c0_i32_0, %c0_i32_1 : i32, i32, i32, i32
  }
  func.func @transform_1(%arg0: i32) -> (i32, i32) {
    %c0_i32 = arith.constant 0 : i32
    %c0_i32_0 = arith.constant 0 : i32
    %c0_i32_1 = arith.constant 0 : i32
    return %c0_i32, %c0_i32_0 : i32, i32
  }
  func.func @transform_2(%arg0: i32) -> (i32, i32) {
    %c0_i32 = arith.constant 0 : i32
    %c0_i32_0 = arith.constant 0 : i32
    %c0_i32_1 = arith.constant 0 : i32
    return %c0_i32, %c0_i32_0 : i32, i32
  }
  func.func @transform_3(%arg0: i32) -> (i32, i32, i32) {
    %c0_i32 = arith.constant 0 : i32
    %c0_i32_0 = arith.constant 0 : i32
    %c0_i32_1 = arith.constant 0 : i32
    return %arg0, %c0_i32, %c0_i32_0 : i32, i32, i32
  }
}

</mosaic_0001>

<bundles_post_ra>
// kernel: tpu_custom_call.1
= control target key start
LH: loop header
LB: loop body
LE: loop exit
PB: predicated region body
PF: predicated region fallthrough
CT: control target
= control target key end

     0   :  { %s2280_s12 = smov 0   ;;  %s3493_s0 = inlined_call_operand.vmem [shape: bf16[2,18,18,3], index: 0, kind: input, shape index: {}]   ;;  %s3494_s1 = inlined_call_operand.vmem [shape: bf16[27,8], index: 1, kind: input, shape index: {}]   ;;  %s3495_s2 = inlined_call_operand.vmem [shape: f32[1,8], index: 2, kind: input, shape index: {}]   ;;  %s3496_s3 = inlined_call_operand.vmem [shape: bf16[2,256,8], index: 3, kind: output, shape index: {}]  }
   0x1 LB: > { %s1981_s13 = sadd.s32 4294967295, %s2249_s12   ;;  %p1985_p0 = scmp.ge.s32.totalorder %s2249_s12, 1  ;;  %s2249_s12 = sphi %s2280_s12, %s13_s12  }
   0x2   : > { %p137_p1 = scmp.lt.s32.totalorder %s2249_s12, 3 }
   0x4   : > { %p138_p2 = pnand %p1985_p0, %p137_p1 }
   0x6   : > { %141 = sbr.rel (%p138_p2) target bundleno = 625 (0x271), region = 32 }
   0xd   : > { %p161_p3 = scmp.lt.s32.totalorder %s1981_s13, 1  ;;  %vm661_vm0 = vcmask 1042432   ;;  %vm662_vm1 = vcmask 1046532   ;;  %vm226_vm2 = vsmask.f32 3328  ;;  %s2251_s18 = smov 9  }
   0xe   : > { %vm227_vm3 = vsmask.f32 7440  ;;  %vm2326_vm4 = vmor %vm661_vm0, %vm662_vm1  ;;  %s2252_s19 = smov 6   ;;  %s2253_s20 = smov 3   ;;  %vm1597_vm6 = vcmask 1044480   ;;  %vm1598_vm7 = vcmask 1045504  }
   0xf   : > { %s3523_s13 = smov (!%p161_p3, %s1981_s13), 1  ;;  %vm2371_vm5 = vmor %vm226_vm2, %vm227_vm3  ;;  %s2254_s21 = smov 12   ;;  %vm1262_vm8 = vcmask 23552   ;;  %vm1311_vm9 = vcmask 48128   ;;  %vm1344_vm10 = vcmask 72704   ;;  %vm1377_vm11 = vcmask 97280  }
  0x10   : > { %s2205_s14 = smul.u32 216, %s3523_s13  ;;  %s2255_s22 = smov 15   ;;  %vm1410_vm12 = vcmask 121856   ;;  %vm1443_vm13 = vcmask 146432   ;;  %vm1476_vm14 = vcmask 171008   ;;  %vm1509_vm15 = vcmask 195584  }
  0x11   : > { %s2256_s23 = smov 18   ;;  %s2257_s24 = smov 21   ;;  %vm1564_vm0 = vcmask 220160   ;;  %vm1893_vm1 = vcmask 60416  }
  0x12   : > { %s2294_s17 = scalar_lea.vmem %s3493_s0, %s2205_s14  ;;  %s2258_s27 = smov 24  }
  0x13   : > { %v2297_v0 = vld [vmem:[%s2294_s17 + $0x6c] sm:$0xf]  ;;  %v2300_v1 = vld [vmem:[%s2294_s17 + $0x70] sm:$0xf]  ;;  %v2314_v12 = vld [vmem:[%s2294_s17 + $0x60] sm:$0xf] }
  0x14   : > { %v175_v2 = vld [vmem:[%s2294_s17 + $0xc] sm:$0xf]  ;;  %v459_v3 = vshrl.u32 %v2300_v1, 16  ;;  %v2306_v4 = vcombine.low %v2297_v0, %v2300_v1  ;;  %v446_v5 = vshrl.u32 %v2297_v0, 16  ;;  %v449_v6 = vshll.u32 %v2297_v0, 16  ;;  %s2114_s5 = sshll.u32 %s3523_s13, 7 }
  0x15   : > { %v176_v7 = vld [vmem:[%s2294_s17 + $0x10] sm:$0xf]  ;;  %v254_v11 = vshrl.u32 %v175_v2, 16  ;;  %v257_v13 = vshll.u32 %v175_v2, 16  ;;  %v2319_v14 = vld [vmem:[%s2294_s17 + $0x64] sm:$0xf]  ;;  %s3393_s8 = scalar_lea.vmem %s3496_s3, %s2114_s5 }
  0x16   : > { %v263_v8 = vshll.u32 %v176_v7, 16  ;;  %v267_v9 = vshrl.u32 %v176_v7, 16  ;;  %v2311_v10 = vcombine.low %v175_v2, %v176_v7  ;;  %1071 = vrot.lane.b32.xlu1 %v2306_v4, %s2251_s18  ;;  %v2322_v15 = vld [vmem:[%s2294_s17 + $0x68] sm:$0x1]  ;;  %v1997_v17 = vrot.slane %v2314_v12, 9 }
  0x17   : > { %v256_v19 = vrot.slane %v254_v11, 4  ;;  %v722_v20 = vrot.slane %v2319_v14, 5  ;;  %v725_v21 = vrot.slane %v2322_v15, 5  ;;  %v2336_v22 = vld [vmem:[%s2294_s17] sm:$0xf]  ;;  %v259_v23 = vrot.slane %v257_v13, 5 }
  0x18   : > { %v269_v18 = vrot.slane %v267_v9, 4  ;;  %1055 = vrot.lane.b32.xlu0 %v2311_v10, %s2251_s18  ;;  %v2339_v24 = vld [vmem:[%s2294_s17 + $0x4] sm:$0xf]  ;;  %v174_v25 = vld [vmem:[%s2294_s17 + $0x8] sm:$0x1]  ;;  %v1989_v26 = vrot.slane %v2336_v22, 9 }
  0x19   : > { %v723_v27 = vsel %vm2326_vm4, %v1997_v17, %v722_v20  ;;  %v724_v28 = vrot.slane %v722_v20, 4  ;;  %v666_v29 = vrot.slane %v2339_v24, 5  ;;  %v669_v30 = vrot.slane %v174_v25, 5  ;;  %v2347_v31 = vld [vmem:[%s2294_s17 + $0x74] sm:$0x1] }
  0x1a   : > { %v1998_v32 = vrot.slane %v2297_v0, 9  ;;  %v729_v33 = vrot.slane %v2300_v1, 5  ;;  %v732_v34 = vrot.slane %v2347_v31, 5  ;;  %v177_v35 = vld [vmem:[%s2294_s17 + $0x14] sm:$0x1]  ;;  %v1990_v36 = vrot.slane %v175_v2, 9 }
  0x1b   : > { %v726_v37 = vsel %vm2326_vm4, %v724_v28, %v725_v21  ;;  %v667_v38 = vsel %vm2326_vm4, %v1989_v26, %v666_v29  ;;  %v668_v39 = vrot.slane %v666_v29, 4  ;;  %v673_v40 = vrot.slane %v176_v7, 5 }
  0x1c   : > { %v2357_v41 = vcombine.low %v723_v27, %v726_v37  ;;  %v730_v42 = vsel %vm2326_vm4, %v1998_v32, %v729_v33  ;;  %v731_v43 = vrot.slane %v729_v33, 4  ;;  %v676_v44 = vrot.slane %v177_v35, 5 }
  0x1d   : > { %v670_v45 = vsel %vm2326_vm4, %v668_v39, %v669_v30  ;;  %v674_v46 = vsel %vm2326_vm4, %v1990_v36, %v673_v40  ;;  %v675_v47 = vrot.slane %v673_v40, 4  ;;  %v260_v48 = vor.u32 %v259_v23, %v256_v19  ;;  %v2415_v39 = vld [vmem:[%s2294_s17 + $0x7c] sm:$0xf] }
  0x1e   : > { %1036 = vrot.lane.b32.xlu1 %v2357_v41, %s2252_s19  ;;  %v2039_v49 = vcombine.low %v667_v38, %v670_v45  ;;  %v733_v50 = vsel %vm2326_vm4, %v731_v43, %v732_v34  ;;  %v265_v52 = vrot.slane %v263_v8, 5  ;;  %v273_v53 = vshll.u32 %v177_v35, 16  ;;  %v2410_v35 = vld [vmem:[%s2294_s17 + $0x78] sm:$0xf] }
  0x1f   : > { %v2375_v54 = vcombine.low %v730_v42, %v733_v50  ;;  %v677_v55 = vsel %vm2326_vm4, %v675_v47, %v676_v44  ;;  %v261_v56 = vrot.slane %v260_v48, 4  ;;  %v230_v57 = vshrl.u32 %v2336_v22, 16  ;;  %v2427_v50 = vld [vmem:[%s2294_s17 + $0x1c] sm:$0xf] }
  0x20   : > { %1020 = vrot.lane.b32.xlu0 %v2039_v49, %s2252_s19  ;;  %v2381_v58 = vcombine.low %v674_v46, %v677_v55  ;;  %v270_v59 = vor.u32 %v269_v18, %v265_v52  ;;  %v275_v60 = vrot.slane %v273_v53, 5  ;;  %v233_v61 = vshll.u32 %v2336_v22, 16  ;;  %v2424_v49 = vld [vmem:[%s2294_s17 + $0x18] sm:$0xf] }
  0x21   : > { %3508 = vst [vmem:[#allocation2_spill] sm:$0xff] %v2375_v54  ;;  %v266_v62 = vsel %vm2371_vm5, %v261_v56, %v265_v52  ;;  %v232_v63 = vrot.slane %v230_v57, 4  ;;  %v239_v2 = vshll.u32 %v2339_v24, 16  ;;  %v243_v7 = vshrl.u32 %v2339_v24, 16 }
  0x22   : > { %1038 = vrot.lane.b32.xlu1 %v2375_v54, %s2252_s19  ;;  %v271_v8 = vrot.slane %v270_v59, 4  ;;  %v235_v9 = vrot.slane %v233_v61, 5  ;;  %v249_v11 = vshll.u32 %v174_v25, 16  ;;  %v448_v13 = vrot.slane %v446_v5, 4 }
  0x23   : > { %v241_v17 = vrot.slane %v239_v2, 5  ;;  %v245_v18 = vrot.slane %v243_v7, 4  ;;  %v451_v19 = vrot.slane %v449_v6, 5  ;;  %v455_v20 = vshll.u32 %v2300_v1, 16 }
  0x24   : > { %1022 = vrot.lane.b32.xlu0 %v2381_v58, %s2252_s19  ;;  %v276_v21 = vsel %vm2371_vm5, %v271_v8, %v275_v60  ;;  %v236_v23 = vor.u32 %v235_v9, %v232_v63  ;;  %v251_v26 = vrot.slane %v249_v11, 5  ;;  %v461_v25 = vrot.slane %v459_v3, 4  ;;  %v204_v60 = vld [vmem:[%s2294_s17 + $0x80] sm:$0x1] }
  0x25   : > { %v2401_v5 = vcombine.low %v266_v62, %v276_v21  ;;  %v246_v27 = vor.u32 %v245_v18, %v241_v17  ;;  %v452_v28 = vor.u32 %v451_v19, %v448_v13  ;;  %v457_v0 = vrot.slane %v455_v20, 5  ;;  %v2451_v20 = vld [vmem:[%s2294_s17 + $0x20] sm:$0x1] }
  0x26   : > { %v237_v6 = vrot.slane %v236_v23, 4  ;;  %v465_v29 = vshll.u32 %v2347_v31, 16  ;;  %v422_v30 = vshrl.u32 %v2314_v12, 16  ;;  %v425_v32 = vshll.u32 %v2314_v12, 16 }
  0x27   : > { %942 = vrot.lane.b32.xlu1 %v2401_v5, %s2253_s20  ;;  %v247_v1 = vrot.slane %v246_v27, 4  ;;  %v453_v33 = vrot.slane %v452_v28, 4  ;;  %v462_v3 = vor.u32 %v461_v25, %v457_v0  ;;  %v431_v34 = vshll.u32 %v2319_v14, 16 }
  0x28   : > { %v242_v31 = vsel %vm2371_vm5, %v237_v6, %v241_v17  ;;  %v467_v36 = vrot.slane %v465_v29, 5  ;;  %v424_v37 = vrot.slane %v422_v30, 4  ;;  %v427_v38 = vrot.slane %v425_v32, 5 }
  0x29   : > { %v252_v40 = vsel %vm2371_vm5, %v247_v1, %v251_v26  ;;  %v458_v42 = vsel %vm2371_vm5, %v453_v33, %v457_v0  ;;  %v463_v43 = vrot.slane %v462_v3, 4  ;;  %v433_v44 = vrot.slane %v431_v34, 5 }
  0x2a   : > { %v2023_v45 = vcombine.low %v242_v31, %v252_v40  ;;  %v428_v46 = vor.u32 %v427_v38, %v424_v37  ;;  %v435_v47 = vshrl.u32 %v2319_v14, 16  ;;  %v441_v48 = vshll.u32 %v2322_v15, 16 }
  0x2b   : > { %v468_v52 = vsel %vm2371_vm5, %v463_v43, %v467_v36  ;;  %v470_v53 = vshrl.u32 %v2410_v35, 16  ;;  %v473_v55 = vshll.u32 %v2410_v35, 16  ;;  %v483_v56 = vshrl.u32 %v2415_v39, 16 }
  0x2c   : > { %940 = vrot.lane.b32.xlu0 %v2023_v45, %s2253_s20  ;;  %v2435_v57 = vcombine.low %v458_v42, %v468_v52  ;;  %v429_v59 = vrot.slane %v428_v46, 4  ;;  %v437_v15 = vrot.slane %v435_v47, 4  ;;  %v443_v61 = vrot.slane %v441_v48, 5  ;;  %v2478_v52 = vld [vmem:[%s2294_s17 + $0x84] sm:$0xf] }
  0x2d   : > { %v278_v62 = vshrl.u32 %v2424_v49, 16  ;;  %v281_v63 = vshll.u32 %v2424_v49, 16  ;;  %v291_v2 = vshrl.u32 %v2427_v50, 16  ;;  %v2447_v9 = vcombine.low %v2410_v35, %v2415_v39 }
  0x2e   : > { %3509 = vst [vmem:[#allocation3_spill] sm:$0xff] %v2435_v57  ;;  %958 = vrot.lane.b32.xlu1 %v2435_v57, %s2253_s20  ;;  %v434_v7 = vsel %vm2371_vm5, %v429_v59, %v433_v44  ;;  %v438_v8 = vor.u32 %v437_v15, %v433_v44  ;;  %v472_v11 = vrot.slane %v470_v53, 4  ;;  %v475_v13 = vrot.slane %v473_v55, 5  ;;  %v2481_v53 = vld [vmem:[%s2294_s17 + $0x88] sm:$0xf] }
  0x2f   : > { %v479_v17 = vshll.u32 %v2415_v39, 16  ;;  %v485_v18 = vrot.slane %v483_v56, 4  ;;  %v489_v19 = vshll.u32 %v204_v60, 16  ;;  %v280_v23 = vrot.slane %v278_v62, 4 }
  0x30   : > { %v439_v21 = vrot.slane %v438_v8, 4  ;;  %v283_v26 = vrot.slane %v281_v63, 5  ;;  %v287_v25 = vshll.u32 %v2427_v50, 16  ;;  %v476_v27 = vor.u32 %v475_v13, %v472_v11  ;;  %v2511_v13 = vld [vmem:[%s2294_s17 + $0x24] sm:$0xf] }
  0x31   : > { %v481_v28 = vrot.slane %v479_v17, 5  ;;  %v293_v0 = vrot.slane %v291_v2, 4  ;;  %v297_v32 = vshll.u32 %v2451_v20, 16  ;;  %v491_v34 = vrot.slane %v489_v19, 5  ;;  %v2514_v17 = vld [vmem:[%s2294_s17 + $0x28] sm:$0xf] }
  0x32   : > { %v444_v6 = vsel %vm2371_vm5, %v439_v21, %v443_v61  ;;  %1073 = vrot.lane.b32.xlu1 %v2447_v9, %s2251_s18  ;;  %v284_v29 = vor.u32 %v283_v26, %v280_v23  ;;  %v289_v30 = vrot.slane %v287_v25, 5  ;;  %v477_v33 = vrot.slane %v476_v27, 4  ;;  %v207_v23 = vld [vmem:[%s2294_s17 + $0x8c] sm:$0x1] }
  0x33   : > { %v2459_v1 = vcombine.low %v434_v7, %v444_v6  ;;  %v486_v3 = vor.u32 %v485_v18, %v481_v28  ;;  %v736_v36 = vrot.slane %v2415_v39, 5  ;;  %v2466_v37 = vcombine.low %v2424_v49, %v2427_v50 }
  0x34   : > { %v294_v31 = vor.u32 %v293_v0, %v289_v30  ;;  %v482_v38 = vsel %vm2371_vm5, %v477_v33, %v481_v28  ;;  %v285_v42 = vrot.slane %v284_v29, 4  ;;  %v299_v44 = vrot.slane %v297_v32, 5 }
  0x35   : > { %956 = vrot.lane.b32.xlu0 %v2459_v1, %s2253_s20  ;;  %v487_v40 = vrot.slane %v486_v3, 4  ;;  %v1999_v39 = vrot.slane %v2410_v35, 9  ;;  %v738_v46 = vrot.slane %v736_v36, 4  ;;  %v739_v47 = vrot.slane %v204_v60, 5 }
  0x36   : > { %1106 = vrot.lane.b32.xlu1 %v2435_v57, %s2254_s21  ;;  %v295_v43 = vrot.slane %v294_v31, 4  ;;  %v290_v35 = vsel %vm2371_vm5, %v285_v42, %v289_v30  ;;  %v680_v59 = vrot.slane %v2427_v50, 5  ;;  %v494_v60 = vshrl.u32 %v2478_v52, 16  ;;  %v183_v42 = vld [vmem:[%s2294_s17 + $0x2c] sm:$0x1] }
  0x37   : > { %v492_v45 = vsel %vm2371_vm5, %v487_v40, %v491_v34  ;;  %v737_v56 = vsel %vm2326_vm4, %v1999_v39, %v736_v36  ;;  %v740_v15 = vsel %vm2326_vm4, %v738_v46, %v739_v47  ;;  %v497_v61 = vshll.u32 %v2478_v52, 16 }
  0x38   : > { %v2475_v48 = vcombine.low %v482_v38, %v492_v45  ;;  %v300_v55 = vsel %vm2371_vm5, %v295_v43, %v299_v44  ;;  %v507_v62 = vshrl.u32 %v2481_v53, 16  ;;  %v503_v63 = vshll.u32 %v2481_v53, 16 }
  0x39   : > { %1057 = vrot.lane.b32.xlu0 %v2466_v37, %s2251_s18  ;;  %v2502_v2 = vcombine.low %v290_v35, %v300_v55  ;;  %v1991_v7 = vrot.slane %v2424_v49, 9  ;;  %v2507_v50 = vcombine.low %v737_v56, %v740_v15  ;;  %v682_v8 = vrot.slane %v680_v59, 4  ;;  %v2237_v15 = vld [vmem:[%s3494_s1] sm:$0xff]  }
  0x3a   : > { %1108 = vrot.lane.b32.xlu1 %v2475_v48, %s2254_s21  ;;  %v683_v11 = vrot.slane %v2451_v20, 5  ;;  %v496_v18 = vrot.slane %v494_v60, 4  ;;  %v499_v19 = vrot.slane %v497_v61, 5  ;;  %v509_v21 = vrot.slane %v507_v62, 4  ;;  %2165 = vmatprep.subr.bf16.mxu0 %v2237_v15 }
  0x3b   : > { %v681_v49 = vsel %vm2326_vm4, %v1991_v7, %v680_v59  ;;  %v302_v26 = vshrl.u32 %v2511_v13, 16  ;;  %v305_v25 = vshll.u32 %v2511_v13, 16  ;;  %v315_v27 = vshrl.u32 %v2514_v17, 16  ;;  %2201 = vmatprep.subr.bf16.mxu1 %v2237_v15  ;;  %2166 = vmatpush3.bf16.msra.mxu0 %v2237_v15 }
  0x3c   : > { %v684_v20 = vsel %vm2326_vm4, %v682_v8, %v683_v11  ;;  %v311_v28 = vshll.u32 %v2514_v17, 16  ;;  %v500_v0 = vor.u32 %v499_v19, %v496_v18  ;;  %v513_v29 = vshll.u32 %v207_v23, 16  ;;  %2203 = vmatpush3.bf16.msra.mxu1 %v2237_v15  ;;  %v2240_v15 = vld [vmem:[%s3494_s1 + $0x8] sm:$0x3f]  }
  0x3d   : > { %1090 = vrot.lane.b32.xlu0 %v2401_v5, %s2254_s21  ;;  %v505_v5 = vrot.slane %v503_v63, 5  ;;  %v2531_v30 = vcombine.low %v681_v49, %v684_v20  ;;  %v2535_v32 = vcombine.low %v2478_v52, %v2481_v53  ;;  %v304_v33 = vrot.slane %v302_v26, 4  ;;  %v2601_v49 = vld [vmem:[%s2294_s17 + $0x94] sm:$0xf] }
  0x3e   : > { %1141 = vrot.lane.b32.xlu1 %v2375_v54, %s2255_s22  ;;  %v307_v3 = vrot.slane %v305_v25, 5  ;;  %v313_v34 = vrot.slane %v311_v28, 5  ;;  %v317_v31 = vrot.slane %v315_v27, 4  ;;  %v501_v36 = vrot.slane %v500_v0, 4  ;;  %v2621_v28 = vld [vmem:[%s2294_s17 + $0x34] sm:$0xf] }
  0x3f   : > { %v510_v6 = vor.u32 %v509_v21, %v505_v5  ;;  %v515_v40 = vrot.slane %v513_v29, 5  ;;  %v321_v44 = vshll.u32 %v183_v42, 16  ;;  %v2552_v46 = vcombine.low %v2511_v13, %v2514_v17 }
  0x40   : > { %v318_v43 = vor.u32 %v317_v31, %v313_v34  ;;  %v506_v39 = vsel %vm2371_vm5, %v501_v36, %v505_v5  ;;  %v743_v59 = vrot.slane %v2481_v53, 5  ;;  %v2000_v53 = vrot.slane %v2478_v52, 9 }
  0x41   : > { %1092 = vrot.lane.b32.xlu0 %v2502_v2, %s2254_s21  ;;  %v511_v38 = vrot.slane %v510_v6, 4  ;;  %3510 = vst [vmem:[#allocation4_spill] sm:$0xff] %v2552_v46  ;;  %v323_v56 = vrot.slane %v321_v44, 5  ;;  %v746_v63 = vrot.slane %v207_v23, 5  ;;  %v687_v8 = vrot.slane %v2514_v17, 5 }
  0x42   : > { %1143 = vrot.lane.b32.xlu1 %v2507_v50, %s2255_s22  ;;  %v319_v55 = vrot.slane %v318_v43, 4  ;;  %v745_v62 = vrot.slane %v743_v59, 4  ;;  %v744_v52 = vsel %vm2326_vm4, %v2000_v53, %v743_v59  ;;  %v1992_v19 = vrot.slane %v2511_v13, 9  ;;  %v2598_v23 = vld [vmem:[%s2294_s17 + $0x90] sm:$0xf] }
  0x43   : > { %v516_v45 = vsel %vm2371_vm5, %v511_v38, %v515_v40  ;;  %v689_v5 = vrot.slane %v687_v8, 4  ;;  %v690_v21 = vrot.slane %v183_v42, 5  ;;  %v518_v26 = vshrl.u32 %v2598_v23, 16  ;;  %v186_v59 = vld [vmem:[%s2294_s17 + $0x38] sm:$0x1] }
  0x44   : > { %v2556_v47 = vcombine.low %v506_v39, %v516_v45  ;;  %v324_v61 = vsel %vm2371_vm5, %v319_v55, %v323_v56  ;;  %v747_v11 = vsel %vm2326_vm4, %v745_v62, %v746_v63  ;;  %v688_v17 = vsel %vm2326_vm4, %v1992_v19, %v687_v8 }
  0x45   : > { %1125 = vrot.lane.b32.xlu0 %v2381_v58, %s2255_s22  ;;  %v308_v58 = vor.u32 %v307_v3, %v304_v33  ;;  %v2586_v18 = vcombine.low %v744_v52, %v747_v11  ;;  %v521_v20 = vshll.u32 %v2598_v23, 16  ;;  %v531_v25 = vshrl.u32 %v2601_v49, 16  ;;  %v210_v3 = vld [vmem:[%s2294_s17 + $0x98] sm:$0x1] }
  0x46   : > { %1176 = vrot.lane.b32.xlu1 %v2447_v9, %s2256_s23  ;;  %v527_v27 = vshll.u32 %v2601_v49, 16  ;;  %v520_v0 = vrot.slane %v518_v26, 4  ;;  %v335_v36 = vshll.u32 %v2621_v28, 16  ;;  %v537_v42 = vshll.u32 %v210_v3, 16 }
  0x47   : > { %v309_v35 = vrot.slane %v308_v58, 4  ;;  %v523_v6 = vrot.slane %v521_v20, 5  ;;  %v533_v33 = vrot.slane %v531_v25, 4  ;;  %v2636_v58 = vcombine.low %v2598_v23, %v2601_v49 }
  0x48   : > { %v529_v29 = vrot.slane %v527_v27, 5  ;;  %v337_v39 = vrot.slane %v335_v36, 5  ;;  %v539_v56 = vrot.slane %v537_v42, 5  ;;  %v2259_v53 = vmov 65535   ;;  %v2665_v27 = vld [vmem:[%s2294_s17 + $0x9c] sm:$0xf] }
  0x49   : > { %1127 = vrot.lane.b32.xlu0 %v2531_v30, %s2255_s22  ;;  %v314_v60 = vsel %vm2371_vm5, %v309_v35, %v313_v34  ;;  %v524_v38 = vor.u32 %v523_v6, %v520_v0  ;;  %3511 = vst [vmem:[#allocation5_spill] sm:$0xff] %v2636_v58  ;;  %v1599_v62 = vsel %vm1597_vm6, 4294967295, %v2259_v53  ;;  %v750_v52 = vrot.slane %v2601_v49, 5  ;;  %v2668_v0 = vld [vmem:[%s2294_s17 + $0xa0] sm:$0xf] }
  0x4a   : > { %1178 = vrot.lane.b32.xlu1 %v2535_v32, %s2256_s23  ;;  %v2573_v7 = vcombine.low %v314_v60, %v324_v61  ;;  %v534_v40 = vor.u32 %v533_v33, %v529_v29  ;;  %v345_v61 = vshll.u32 %v186_v59, 16  ;;  %v1600_v11 = vsel %vm1598_vm7, %v1599_v62, 0 }
  0x4b   : > { %v525_v35 = vrot.slane %v524_v38, 4  ;;  %v1602_v19 = vand.u32 %v2240_v15, %v1600_v11  ;;  %v752_v20 = vrot.slane %v750_v52, 4  ;;  %v753_v25 = vrot.slane %v210_v3, 5 }
  0x4c   : > { %v535_v55 = vrot.slane %v534_v40, 4  ;;  %v347_v49 = vrot.slane %v345_v61, 5  ;;  %v542_v33 = vshrl.u32 %v2665_v27, 16  ;;  %v697_v40 = vrot.slane %v186_v59, 5 }
  0x4d   : > { %1160 = vrot.lane.b32.xlu0 %v2466_v37, %s2256_s23  ;;  %v530_v63 = vsel %vm2371_vm5, %v525_v35, %v529_v29  ;;  %2167 = vmatprep.subr.bf16.mxu0 %v1602_v19  ;;  %v754_v3 = vsel %vm2326_vm4, %v752_v20, %v753_v25 }
  0x4e   : > { %1211 = vrot.lane.b32.xlu1 %v2475_v48, %s2257_s24  ;;  %v540_v8 = vsel %vm2371_vm5, %v535_v55, %v539_v56  ;;  %2202 = vmatprep.subr.bf16.mxu1 %v1602_v19 }
  0x4f   : > { %2168 = vmatpush3.bf16.msra.mxu0 %v1602_v19  ;;  %2204 = vmatpush3.bf16.msra.mxu1 %v1602_v19 }
  0x51   : > { %1162 = vrot.lane.b32.xlu0 %v2552_v46, %s2256_s23 }
  0x52   : > { %1213 = vrot.lane.b32.xlu1 %v2556_v47, %s2257_s24 }
  0x55   : > { %1195 = vrot.lane.b32.xlu0 %v2502_v2, %s2257_s24 }
  0x56   : > { %1246 = vrot.lane.b32.xlu1 %v2507_v50, %s2258_s27 }
  0x59   : > { %1197 = vrot.lane.b32.xlu0 %v2573_v7, %s2257_s24 }
  0x5a   : > { %960 = vrot.lane.b32.xlu1 %v2475_v48, %s2253_s20  ;;  %v691_v48 = vsel %vm2326_vm4, %v689_v5, %v690_v21  ;;  %v2001_v21 = vrot.slane %v2598_v23, 9 }
  0x5b   : > { %v2605_v13 = vcombine.low %v688_v17, %v691_v48  ;;  %v2662_v17 = vcombine.low %v530_v63, %v540_v8  ;;  %v2721_v63 = vcombine.low %v2665_v27, %v2668_v0 }
  0x5c   : > { %v751_v29 = vsel %vm2326_vm4, %v2001_v21, %v750_v52 }
  0x5d   : > { %1230 = vrot.lane.b32.xlu0 %v2531_v30, %s2258_s27  ;;  %v2694_v42 = vcombine.low %v751_v29, %v754_v3  ;;  %3513 = vst [vmem:[#allocation7_spill] sm:$0xff] %v2721_v63 }
  0x5e   : > { %1248 = vrot.lane.b32.xlu1 %v2586_v18, %s2258_s27 }
  0x61   : > { %944 = vrot.lane.b32.xlu0 %v2502_v2, %s2253_s20  ;;  %v2618_v2 = vld [vmem:[%s2294_s17 + $0x30] sm:$0xf] }
  0x62   : > { %962 = vrot.lane.b32.xlu1 %v2556_v47, %s2253_s20  ;;  %v326_v34 = vshrl.u32 %v2618_v2, 16  ;;  %v329_v31 = vshll.u32 %v2618_v2, 16  ;;  %v2657_v5 = vcombine.low %v2618_v2, %v2621_v28  ;;  %v1993_v36 = vrot.slane %v2618_v2, 9 }
  0x64   : > { %v328_v43 = vrot.slane %v326_v34, 4  ;;  %v331_v44 = vrot.slane %v329_v31, 5  ;;  %3512 = vst [vmem:[#allocation6_spill] sm:$0xff] %v2657_v5  ;;  %v555_v34 = vshrl.u32 %v2668_v0, 16  ;;  %v551_v31 = vshll.u32 %v2668_v0, 16 }
  0x65   : > { %1232 = vrot.lane.b32.xlu0 %v2605_v13, %s2258_s27 }
  0x66   : > { %1040 = vrot.lane.b32.xlu1 %v2507_v50, %s2252_s19  ;;  %v339_v50 = vshrl.u32 %v2621_v28, 16  ;;  %v553_v35 = vrot.slane %v551_v31, 5  ;;  %v557_v55 = vrot.slane %v555_v34, 4 }
  0x68   : > { %v341_v45 = vrot.slane %v339_v50, 4  ;;  %v558_v61 = vor.u32 %v557_v55, %v553_v35 }
  0x69   : > { %946 = vrot.lane.b32.xlu0 %v2573_v7, %s2253_s20 }
  0x6a   : > { %1042 = vrot.lane.b32.xlu1 %v2586_v18, %s2252_s19  ;;  %v342_v60 = vor.u32 %v341_v45, %v337_v39 }
  0x6c   : > { %v343_v26 = vrot.slane %v342_v60, 4 }
  0x6d   : > { %1024 = vrot.lane.b32.xlu0 %v2531_v30, %s2252_s19  ;;  %v332_v30 = vor.u32 %v331_v44, %v328_v43  ;;  %v2697_v43 = vld [vmem:[%s2294_s17 + $0x3c] sm:$0xf]  ;;  %v2700_v44 = vld [vmem:[%s2294_s17 + $0x40] sm:$0xf] }
  0x6e   : > { %1075 = vrot.lane.b32.xlu1 %v2535_v32, %s2251_s18  ;;  %v348_v6 = vsel %vm2371_vm5, %v343_v26, %v347_v49  ;;  %v350_v56 = vshrl.u32 %v2697_v43, 16  ;;  %v353_v59 = vshll.u32 %v2697_v43, 16  ;;  %v363_v15 = vshrl.u32 %v2700_v44, 16  ;;  %v189_v49 = vld [vmem:[%s2294_s17 + $0x44] sm:$0x1] }
  0x6f   : > { %v333_v48 = vrot.slane %v332_v30, 4  ;;  %v359_v30 = vshll.u32 %v2700_v44, 16  ;;  %v2740_v29 = vcombine.low %v2697_v43, %v2700_v44 }
  0x70   : > { %v352_v8 = vrot.slane %v350_v56, 4  ;;  %v355_v52 = vrot.slane %v353_v59, 5  ;;  %v365_v19 = vrot.slane %v363_v15, 4  ;;  %v701_v56 = vrot.slane %v2700_v44, 5 }
  0x71   : > { %1026 = vrot.lane.b32.xlu0 %v2605_v13, %s2252_s19  ;;  %v338_v23 = vsel %vm2371_vm5, %v333_v48, %v337_v39  ;;  %v544_v39 = vrot.slane %v542_v33, 4  ;;  %v361_v11 = vrot.slane %v359_v30, 5  ;;  %v559_v48 = vrot.slane %v558_v61, 4  ;;  %3514 = vst [vmem:[#allocation8_spill] sm:$0xff] %v2740_v29 }
  0x72   : > { %1077 = vrot.lane.b32.xlu1 %v2636_v58, %s2251_s18  ;;  %v2689_v50 = vcombine.low %v338_v23, %v348_v6  ;;  %v356_v20 = vor.u32 %v355_v52, %v352_v8  ;;  %v1994_v44 = vrot.slane %v2697_v43, 9  ;;  %v703_v30 = vrot.slane %v701_v56, 4  ;;  %v2797_v43 = vld [vmem:[%s2294_s17 + $0xa8] sm:$0xf]  ;;  %v2800_v52 = vld [vmem:[%s2294_s17 + $0xac] sm:$0xf] }
  0x73   : > { %v366_v25 = vor.u32 %v365_v19, %v361_v11 }
  0x74   : > { %v357_v3 = vrot.slane %v356_v20, 4 }
  0x75   : > { %1059 = vrot.lane.b32.xlu0 %v2552_v46, %s2251_s18 }
  0x76   : > { %1110 = vrot.lane.b32.xlu1 %v2556_v47, %s2254_s21  ;;  %v694_v47 = vrot.slane %v2621_v28, 5  ;;  %v545_v28 = vshll.u32 %v2665_v27, 16 }
  0x78   : > { %v696_v38 = vrot.slane %v694_v47, 4  ;;  %v547_v45 = vrot.slane %v545_v28, 5  ;;  %v695_v2 = vsel %vm2326_vm4, %v1993_v36, %v694_v47  ;;  %v369_v47 = vshll.u32 %v189_v49, 16 }
  0x79   : > { %1061 = vrot.lane.b32.xlu0 %v2657_v5, %s2251_s18  ;;  %v367_v28 = vrot.slane %v366_v25, 4  ;;  %v757_v36 = vrot.slane %v2668_v0, 5 }
  0x7a   : > { %1112 = vrot.lane.b32.xlu1 %v2662_v17, %s2254_s21  ;;  %v548_v60 = vor.u32 %v547_v45, %v544_v39  ;;  %v371_v34 = vrot.slane %v369_v47, 5  ;;  %v2002_v45 = vrot.slane %v2665_v27, 9  ;;  %v2826_v47 = vld [vmem:[%s2294_s17 + $0x4c] sm:$0xf] }
  0x7c   : > { %v549_v21 = vrot.slane %v548_v60, 4  ;;  %v372_v39 = vsel %vm2371_vm5, %v367_v28, %v371_v34  ;;  %v758_v27 = vsel %vm2326_vm4, %v2002_v45, %v757_v36  ;;  %v704_v60 = vrot.slane %v189_v49, 5 }
  0x7d   : > { %1094 = vrot.lane.b32.xlu0 %v2573_v7, %s2254_s21  ;;  %v213_v7 = vld [vmem:[%s2294_s17 + $0xa4] sm:$0x1]  ;;  %v575_v49 = vshll.u32 %v2800_v52, 16  ;;  %v383_v45 = vshll.u32 %v2826_v47, 16 }
  0x7e   : > { %1145 = vrot.lane.b32.xlu1 %v2586_v18, %s2255_s22  ;;  %v698_v18 = vsel %vm2326_vm4, %v696_v38, %v697_v40  ;;  %v561_v53 = vshll.u32 %v213_v7, 16  ;;  %v554_v23 = vsel %vm2371_vm5, %v549_v21, %v553_v35  ;;  %v362_v40 = vsel %vm2371_vm5, %v357_v3, %v361_v11 }
  0x7f   : > { %v2717_v62 = vcombine.low %v695_v2, %v698_v18  ;;  %v759_v35 = vrot.slane %v757_v36, 4  ;;  %v760_v55 = vrot.slane %v213_v7, 5  ;;  %v2764_v0 = vcombine.low %v362_v40, %v372_v39  ;;  %v216_v36 = vld [vmem:[%s2294_s17 + $0xb0] sm:$0x1] }
  0x80   : > { %v563_v26 = vrot.slane %v561_v53, 5  ;;  %v702_v53 = vsel %vm2326_vm4, %v1994_v44, %v701_v56  ;;  %v566_v21 = vshrl.u32 %v2797_v43, 16  ;;  %v577_v3 = vrot.slane %v575_v49, 5 }
  0x81   : > { %1096 = vrot.lane.b32.xlu0 %v2689_v50, %s2254_s21  ;;  %v761_v7 = vsel %vm2326_vm4, %v759_v35, %v760_v55  ;;  %v387_v39 = vshrl.u32 %v2826_v47, 16  ;;  %v2847_v44 = vcombine.low %v2797_v43, %v2800_v52 }
  0x82   : > { %1147 = vrot.lane.b32.xlu1 %v2694_v42, %s2255_s22  ;;  %v564_v6 = vsel %vm2371_vm5, %v559_v48, %v563_v26  ;;  %v2781_v15 = vcombine.low %v758_v27, %v761_v7  ;;  %v569_v48 = vshll.u32 %v2797_v43, 16  ;;  %v579_v26 = vshrl.u32 %v2800_v52, 16 }
  0x83   : > { %v2744_v33 = vcombine.low %v554_v23, %v564_v6  ;;  %v568_v23 = vrot.slane %v566_v21, 4  ;;  %v585_v27 = vshll.u32 %v216_v36, 16 }
  0x84   : > { %v571_v6 = vrot.slane %v569_v48, 5  ;;  %v581_v28 = vrot.slane %v579_v26, 4 }
  0x85   : > { %1129 = vrot.lane.b32.xlu0 %v2605_v13, %s2255_s22  ;;  %v587_v49 = vrot.slane %v585_v27, 5 }
  0x86   : > { %1180 = vrot.lane.b32.xlu1 %v2636_v58, %s2256_s23  ;;  %v572_v55 = vor.u32 %v571_v6, %v568_v23  ;;  %v582_v56 = vor.u32 %v581_v28, %v577_v3  ;;  %v2854_v23 = vld [vmem:[%s2294_s17 + $0x50] sm:$0x1] }
  0x88   : > { %v2730_v13 = vpop.permute.xlu1 %1071  ;;  %v573_v48 = vrot.slane %v572_v55, 4  ;;  %v583_v26 = vrot.slane %v582_v56, 4  ;;  %v764_v55 = vrot.slane %v2800_v52, 5 }
  0x89   : > { %1131 = vrot.lane.b32.xlu0 %v2717_v62, %s2255_s22 }
  0x8a   : > { %1182 = vrot.lane.b32.xlu1 %v2721_v63, %s2256_s23  ;;  %v2746_v31 = vpop.permute.xlu0 %1055 }
  0x8d   : > { %1164 = vrot.lane.b32.xlu0 %v2657_v5, %s2256_s23  ;;  %v2891_v5 = vld [vmem:[%s2294_s17 + $0xb8] sm:$0xf] }
  0x8e   : > { %1215 = vrot.lane.b32.xlu1 %v2662_v17, %s2257_s24 }
  0x90   : > { %v2749_v38 = vpop.permute.xlu1 %1036 }
  0x91   : > { %1166 = vrot.lane.b32.xlu0 %v2740_v29, %s2256_s23 }
  0x92   : > { %1217 = vrot.lane.b32.xlu1 %v2744_v33, %s2257_s24  ;;  %v2766_v18 = vpop.permute.xlu0 %1020 }
  0x94   : > { %v2760_v2 = vpop.permute.xlu1 %1038 }
  0x95   : > { %1199 = vrot.lane.b32.xlu0 %v2689_v50, %s2257_s24 }
  0x96   : > { %1250 = vrot.lane.b32.xlu1 %v2694_v42, %s2258_s27  ;;  %v2784_v61 = vpop.permute.xlu0 %1022 }
  0x99   : > { %1201 = vrot.lane.b32.xlu0 %v2764_v0, %s2257_s24  ;;  %v2779_v59 = vpop.permute.xlu1 %942 }
  0x9a   : > { %964 = vrot.lane.b32.xlu1 %v2662_v17, %s2253_s20  ;;  %v705_v17 = vsel %vm2326_vm4, %v703_v30, %v704_v60 }
  0x9b   : > { %v2806_v19 = vcombine.low %v702_v53, %v705_v17  ;;  %v385_v53 = vrot.slane %v383_v45, 5  ;;  %v389_v17 = vrot.slane %v387_v39, 4  ;;  %v578_v39 = vsel %vm2371_vm5, %v573_v48, %v577_v3 }
  0x9c   : > { %v588_v45 = vsel %vm2371_vm5, %v583_v26, %v587_v49  ;;  %v766_v26 = vrot.slane %v764_v55, 4  ;;  %v767_v49 = vrot.slane %v216_v36, 5 }
  0x9d   : > { %1234 = vrot.lane.b32.xlu0 %v2717_v62, %s2258_s27  ;;  %v390_v28 = vor.u32 %v389_v17, %v385_v53  ;;  %v2881_v3 = vcombine.low %v578_v39, %v588_v45  ;;  %v603_v39 = vshrl.u32 %v2891_v5, 16 }
  0x9e   : > { %1252 = vrot.lane.b32.xlu1 %v2781_v15, %s2258_s27  ;;  %v2804_v11 = vpop.permute.xlu0 %940 }
  0x9f   : > { %v391_v17 = vrot.slane %v390_v28, 4 }
  0xa0   : > { %v2794_v8 = vpop.permute.xlu1 %958 }
  0xa1   : > { %948 = vrot.lane.b32.xlu0 %v2689_v50, %s2253_s20  ;;  %v2821_v50 = vld [vmem:[%s2294_s17 + $0x48] sm:$0xf] }
  0xa2   : > { %966 = vrot.lane.b32.xlu1 %v2744_v33, %s2253_s20  ;;  %v377_v40 = vshll.u32 %v2821_v50, 16  ;;  %v2876_v27 = vcombine.low %v2821_v50, %v2826_v47 }
  0xa4   : > { %v2814_v20 = vpop.permute.xlu1 %1073  ;;  %v379_v60 = vrot.slane %v377_v40, 5 }
  0xa5   : > { %1236 = vrot.lane.b32.xlu0 %v2806_v19, %s2258_s27 }
  0xa6   : > { %1044 = vrot.lane.b32.xlu1 %v2694_v42, %s2252_s19  ;;  %v374_v42 = vshrl.u32 %v2821_v50, 16 }
  0xa7   : > { %v2823_v25 = vpop.permute.xlu0 %956 }
  0xa8   : > { %v2828_v34 = vpop.permute.xlu1 %1106  ;;  %v376_v30 = vrot.slane %v374_v42, 4  ;;  %v393_v42 = vshll.u32 %v2854_v23, 16 }
  0xa9   : > { %950 = vrot.lane.b32.xlu0 %v2764_v0, %s2253_s20 }
  0xaa   : > { %1046 = vrot.lane.b32.xlu1 %v2781_v15, %s2252_s19  ;;  %v395_v48 = vrot.slane %v393_v42, 5 }
  0xab   : > { %v2839_v35 = vpop.permute.xlu0 %1057 }
  0xac   : > { %v2841_v7 = vpop.permute.xlu1 %1108 }
  0xad   : > { %1028 = vrot.lane.b32.xlu0 %v2717_v62, %s2252_s19  ;;  %v380_v62 = vor.u32 %v379_v60, %v376_v30  ;;  %v2003_v30 = vrot.slane %v2797_v43, 9  ;;  %v2895_v43 = vcombine.low %v2314_v12, %v2319_v14 }
  0xae   : > { %1079 = vrot.lane.b32.xlu1 %v2721_v63, %s2251_s18  ;;  %v2886_v63 = vld [vmem:[%s2294_s17 + $0xb4] sm:$0xf] }
  0xaf   : > { %v2851_v21 = vpop.permute.xlu0 %1090  ;;  %v381_v60 = vrot.slane %v380_v62, 4  ;;  %v396_v62 = vsel %vm2371_vm5, %v391_v17, %v395_v48  ;;  %v765_v28 = vsel %vm2326_vm4, %v2003_v30, %v764_v55  ;;  %v590_v12 = vshrl.u32 %v2886_v63, 16 }
  0xb0   : > { %v2856_v6 = vpop.permute.xlu1 %1141  ;;  %v593_v42 = vshll.u32 %v2886_v63, 16  ;;  %v711_v17 = vrot.slane %v2854_v23, 5  ;;  %v2007_v48 = vcombine.low %v2336_v22, %v2339_v24  ;;  %v605_v22 = vrot.slane %v603_v39, 4 }
  0xb1   : > { %1030 = vrot.lane.b32.xlu0 %v2806_v19, %s2252_s19  ;;  %v386_v36 = vsel %vm2371_vm5, %v381_v60, %v385_v53  ;;  %v599_v53 = vshll.u32 %v2891_v5, 16  ;;  %v1995_v60 = vrot.slane %v2821_v50, 9  ;;  %v592_v23 = vrot.slane %v590_v12, 4 }
  0xb2   : > { %1081 = vrot.lane.b32.xlu1 %v2847_v44, %s2251_s18  ;;  %v2921_v55 = vcombine.low %v386_v36, %v396_v62  ;;  %v2939_v36 = vld [vmem:[%s2294_s17 + $0x58] sm:$0xf]  ;;  %v595_v62 = vrot.slane %v593_v42, 5  ;;  %v2970_v57 = vcombine.low %v2886_v63, %v2891_v5  ;;  %v1265_v46 = vsel %vm1262_vm8, %v2007_v48, %v2804_v11 }
  0xb3   : > { %v2863_v40 = vpop.permute.xlu0 %1092  ;;  %v2941_v58 = vrot.slane %v599_v53, 5  ;;  %v407_v39 = vshll.u32 %v2939_v36, 16 }
  0xb4   : > { %v2870_v56 = vpop.permute.xlu1 %1143  ;;  %v596_v53 = vor.u32 %v595_v62, %v592_v23 }
  0xb5   : > { %1063 = vrot.lane.b32.xlu0 %v2740_v29, %s2251_s18 }
  0xb6   : > { %1114 = vrot.lane.b32.xlu1 %v2744_v33, %s2254_s21  ;;  %v708_v33 = vrot.slane %v2826_v47, 5  ;;  %v768_v47 = vsel %vm2326_vm4, %v766_v26, %v767_v49  ;;  %v1289_v26 = vsel %vm1262_vm8, %v2895_v43, %v2823_v25  ;;  %v2934_v49 = vld [vmem:[%s2294_s17 + $0x54] sm:$0xf]  ;;  %v2946_v25 = vld [vmem:[%s2294_s17 + $0xbc] sm:$0x1] }
  0xb7   : > { %v2883_v52 = vpop.permute.xlu0 %1125  ;;  %v2931_v50 = vcombine.low %v765_v28, %v768_v47  ;;  %v1329_v28 = vsel %vm1311_vm9, %v1289_v26, %v2749_v38  ;;  %v398_v47 = vshrl.u32 %v2934_v49, 16  ;;  %v401_v42 = vshll.u32 %v2934_v49, 16 }
  0xb8   : > { %v2888_v29 = vpop.permute.xlu1 %1176  ;;  %v710_v30 = vrot.slane %v708_v33, 4 }
  0xb9   : > { %1065 = vrot.lane.b32.xlu0 %v2876_v27, %s2251_s18  ;;  %v400_v62 = vrot.slane %v398_v47, 4 }
  0xba   : > { %1116 = vrot.lane.b32.xlu1 %v2881_v3, %s2254_s21  ;;  %v712_v12 = vsel %vm2326_vm4, %v710_v30, %v711_v17  ;;  %v609_v30 = vshll.u32 %v2946_v25, 16  ;;  %v1362_v17 = vsel %vm1344_vm10, %v1329_v28, %v2730_v13  ;;  %v2985_v28 = vrot.slane %v407_v39, 5 }
  0xbb   : > { %v2909_v14 = vpop.permute.xlu0 %1127  ;;  %v1395_v23 = vsel %vm1377_vm11, %v1362_v17, %v2828_v34 }
  0xbc   : > { %v2916_v45 = vpop.permute.xlu1 %1178  ;;  %v1428_v13 = vsel %vm1410_vm12, %v1395_v23, %v2856_v6  ;;  %v611_v47 = vrot.slane %v609_v30, 5  ;;  %v1292_v6 = vsel %vm1262_vm8, %v2306_v4, %v2794_v8 }
  0xbd   : > { %1098 = vrot.lane.b32.xlu0 %v2764_v0, %s2254_s21  ;;  %v1461_v34 = vsel %vm1443_vm13, %v1428_v13, %v2888_v29 }
  0xbe   : > { %1149 = vrot.lane.b32.xlu1 %v2781_v15, %s2255_s22  ;;  %v709_v15 = vsel %vm2326_vm4, %v1995_v60, %v708_v33  ;;  %v411_v33 = vshrl.u32 %v2939_v36, 16  ;;  %v606_v60 = vor.u32 %v605_v22, %v2941_v58  ;;  %v403_v22 = vrot.slane %v401_v42, 5 }
  0xbf   : > { %v2936_v0 = vpop.permute.xlu0 %1160  ;;  %v2966_v26 = vcombine.low %v709_v15, %v712_v12  ;;  %v2983_v15 = vld [vmem:[%s2294_s17 + $0x5c] sm:$0x1]  ;;  %v597_v12 = vrot.slane %v596_v53, 4  ;;  %v1313_v42 = vsel %vm1311_vm9, %v1265_v46, %v2766_v18  ;;  %v1331_v18 = vsel %vm1311_vm9, %v1292_v6, %v2760_v2 }
  0xc0   : > { %v1212_v24 = vpop.permute.xlu1 %1211  ;;  %v413_v11 = vrot.slane %v411_v33, 4  ;;  %v404_v29 = vor.u32 %v403_v22, %v400_v62  ;;  %v417_v39 = vshll.u32 %v2983_v15, 16  ;;  %v1346_v8 = vsel %vm1344_vm10, %v1313_v42, %v2746_v31 }
  0xc1   : > { %1100 = vrot.lane.b32.xlu0 %v2921_v55, %s2254_s21  ;;  %v1494_v17 = vsel %vm1476_vm14, %v1461_v34, %v1212_v24  ;;  %v602_v53 = vsel %vm2371_vm5, %v597_v12, %v2941_v58  ;;  %v1364_v30 = vsel %vm1344_vm10, %v1331_v18, %v2814_v20  ;;  %v1379_v62 = vsel %vm1377_vm11, %v1346_v8, %v2851_v21 }
  0xc2   : > { %1151 = vrot.lane.b32.xlu1 %v2931_v50, %s2255_s22  ;;  %v414_v46 = vor.u32 %v413_v11, %v2985_v28  ;;  %v3018_v2 = vcombine.low %v2934_v49, %v2939_v36  ;;  %v1397_v31 = vsel %vm1377_vm11, %v1364_v30, %v2841_v7  ;;  %v1412_v58 = vsel %vm1410_vm12, %v1379_v62, %v2883_v52 }
  0xc3   : > { %v2960_v38 = vpop.permute.xlu0 %1162  ;;  %v405_v13 = vrot.slane %v404_v29, 4  ;;  %v419_v20 = vrot.slane %v417_v39, 5  ;;  %v1430_v21 = vsel %vm1410_vm12, %v1397_v31, %v2870_v56  ;;  %v1445_v11 = vsel %vm1443_vm13, %v1412_v58, %v2936_v0  ;;  %v221_v58 = vld [vmem:[%s2294_s17 + $0xc4] sm:$0xf] }
  0xc4   : > { %v1214_v54 = vpop.permute.xlu1 %1213  ;;  %v415_v7 = vrot.slane %v414_v46, 4  ;;  %v1268_v52 = vsel %vm1262_vm8, %v2311_v10, %v2779_v59  ;;  %v1463_v12 = vsel %vm1443_vm13, %v1430_v21, %v2916_v45  ;;  %v771_v56 = vrot.slane %v2891_v5, 5 }
  0xc5   : > { %1133 = vrot.lane.b32.xlu0 %v2806_v19, %s2255_s22  ;;  %v607_v19 = vrot.slane %v606_v60, 4  ;;  %v1496_v0 = vsel %vm1476_vm14, %v1463_v12, %v1214_v54  ;;  %v1315_v59 = vsel %vm1311_vm9, %v1268_v52, %v2784_v61  ;;  %v410_v54 = vsel %vm2371_vm5, %v405_v13, %v2985_v28 }
  0xc6   : > { %1184 = vrot.lane.b32.xlu1 %v2847_v44, %s2256_s23  ;;  %v420_v5 = vsel %vm2371_vm5, %v415_v7, %v419_v20  ;;  %v1348_v45 = vsel %vm1344_vm10, %v1315_v59, %v2839_v35  ;;  %v773_v61 = vrot.slane %v771_v56, 4  ;;  %v790_v7 = vshrl.u32 %v221_v58, 16 }
  0xc7   : > { %v1196_v48 = vpop.permute.xlu0 %1195  ;;  %v612_v60 = vsel %vm2371_vm5, %v607_v19, %v611_v47  ;;  %v3073_v39 = vcombine.low %v410_v54, %v420_v5  ;;  %v786_v52 = vshll.u32 %v221_v58, 16 }
  0xc8   : > { %v1247_v23 = vpop.permute.xlu1 %1246  ;;  %v3034_v34 = vcombine.low %v602_v53, %v612_v60  ;;  %v1478_v19 = vsel %vm1476_vm14, %v1445_v11, %v1196_v48  ;;  %v718_v53 = vrot.slane %v2983_v15, 5  ;;  %v220_v15 = vld [vmem:[%s2294_s17 + $0xc0] sm:$0xf] }
  0xc9   : > { %1135 = vrot.lane.b32.xlu0 %v2966_v26, %s2255_s22  ;;  %v1527_v33 = vsel %vm1509_vm15, %v1494_v17, %v1247_v23  ;;  %v2004_v17 = vrot.slane %v2886_v63, 9  ;;  %v774_v23 = vrot.slane %v2946_v25, 5  ;;  %v715_v63 = vrot.slane %v2939_v36, 5 }
  0xca   : > { %1186 = vrot.lane.b32.xlu1 %v2970_v57, %s2256_s23  ;;  %2185 = vmatprep.mubr.msk.bf16.mxu1 %vm1564_vm0, %v1527_v33  ;;  %v1381_v33 = vsel %vm1377_vm11, %v1348_v45, %v2863_v40  ;;  %v777_v21 = vshrl.u32 %v220_v15, 16  ;;  %v780_v11 = vshll.u32 %v220_v15, 16  ;;  %v2055_v45 = vcombine.low %v220_v15, %v221_v58 }
  0xcb   : > { %v1198_v24 = vpop.permute.xlu0 %1197  ;;  %v1414_v28 = vsel %vm1410_vm12, %v1381_v33, %v2909_v14  ;;  %v772_v46 = vsel %vm2326_vm4, %v2004_v17, %v771_v56  ;;  %v775_v14 = vsel %vm2326_vm4, %v773_v61, %v774_v23  ;;  %v788_v56 = vrot.slane %v786_v52, 5 }
  0xcc   : > { %v3020_v22 = vpop.permute.xlu1 %960  ;;  %v1447_v35 = vsel %vm1443_vm13, %v1414_v28, %v2960_v38  ;;  %v3093_v36 = vcombine.low %v772_v46, %v775_v14  ;;  %v1996_v38 = vrot.slane %v2934_v49, 9 }
  0xcd   : > { %1168 = vrot.lane.b32.xlu0 %v2876_v27, %s2256_s23  ;;  %v1480_v40 = vsel %vm1476_vm14, %v1447_v35, %v1198_v24  ;;  %v717_v24 = vrot.slane %v715_v63, 4 }
  0xce   : > { %1219 = vrot.lane.b32.xlu1 %v2881_v3, %s2257_s24 }
  0xcf   : > { %v1231_v47 = vpop.permute.xlu0 %1230  ;;  %v719_v62 = vsel %vm2326_vm4, %v717_v24, %v718_v53  ;;  %v3168_v53 = vld [vmem:[%s2294_s17 + $0xcc] sm:$0xf] }
  0xd0   : > { %v1511_v42 = vsel %vm1509_vm15, %v1478_v19, %v1231_v47  ;;  %v1249_v6 = vpop.permute.xlu1 %1248  ;;  %v779_v19 = vrot.slane %v777_v21, 4  ;;  %v782_v47 = vrot.slane %v780_v11, 5 }
  0xd1   : > { %1170 = vrot.lane.b32.xlu0 %v3018_v2, %s2256_s23  ;;  %2169 = vmatprep.mubr.msk.bf16.mxu0 %vm1564_vm0, %v1511_v42  ;;  %v1529_v10 = vsel %vm1509_vm15, %v1496_v0, %v1249_v6  ;;  %v792_v0 = vrot.slane %v790_v7, 4  ;;  %v222_v6 = vld [vmem:[%s2294_s17 + $0xc8] sm:$0x1] }
  0xd2   : > { %1221 = vrot.lane.b32.xlu1 %v3034_v34, %s2257_s24  ;;  %2186 = vmatmul.mubr.msk.bf16.vlgmr.msra.gmra.mrb[0].mxu1 %vm1564_vm0, %v1529_v10  ;;  %v783_v59 = vor.u32 %v782_v47, %v779_v19  ;;  %v808_v24 = vrot.slane %v222_v6, 5 }
  0xd3   : > { %v3061_v48 = vpop.permute.xlu0 %944  ;;  %v793_v54 = vor.u32 %v792_v0, %v788_v56 }
  0xd4   : > { %v3067_v29 = vpop.permute.xlu1 %962  ;;  %v784_v61 = vrot.slane %v783_v59, 4 }
  0xd5   : > { %1203 = vrot.lane.b32.xlu0 %v2921_v55, %s2257_s24  ;;  %v794_v23 = vrot.slane %v793_v54, 4 }
  0xd6   : > { %1254 = vrot.lane.b32.xlu1 %v2931_v50, %s2258_s27 }
  0xd7   : > { %v1233_v25 = vpop.permute.xlu0 %1232 }
  0xd8   : > { %v1513_v18 = vsel %vm1509_vm15, %v1480_v40, %v1233_v25  ;;  %v3086_v8 = vpop.permute.xlu1 %1040  ;;  %v805_v40 = vrot.slane %v221_v58, 5  ;;  %v814_v58 = vshll.u32 %v3168_v53, 16 }
  0xd9   : > { %1205 = vrot.lane.b32.xlu0 %v3073_v39, %s2257_s24  ;;  %2170 = vmatmul.mubr.msk.bf16.vlgmr.msra.gmra.mrb[0].mxu0 %vm1564_vm0, %v1513_v18  ;;  %v2005_v18 = vrot.slane %v220_v15, 9 }
  0xda   : > { %968 = vrot.lane.b32.xlu1 %v2881_v3, %s2253_s20  ;;  %v716_v3 = vsel %vm2326_vm4, %v1996_v38, %v715_v63  ;;  %v807_v38 = vrot.slane %v805_v40, 4  ;;  %v816_v0 = vrot.slane %v814_v58, 5 }
  0xdb   : > { %v3097_v60 = vpop.permute.xlu0 %946  ;;  %v3117_v13 = vcombine.low %v716_v3, %v719_v62  ;;  %v3171_v62 = vld [vmem:[%s2294_s17 + $0xd0] sm:$0xf]  ;;  %v806_v15 = vsel %vm2326_vm4, %v2005_v18, %v805_v40 }
  0xdc   : > { %v3099_v30 = vpop.permute.xlu1 %1042  ;;  %v809_v11 = vsel %vm2326_vm4, %v807_v38, %v808_v24  ;;  %v824_v7 = vshrl.u32 %v3171_v62, 16  ;;  %v820_v52 = vshll.u32 %v3171_v62, 16 }
  0xdd   : > { %1238 = vrot.lane.b32.xlu0 %v2966_v26, %s2258_s27  ;;  %v3191_v47 = vcombine.low %v806_v15, %v809_v11 }
  0xde   : > { %1256 = vrot.lane.b32.xlu1 %v3093_v36, %s2258_s27  ;;  %v822_v59 = vrot.slane %v820_v52, 5  ;;  %v826_v54 = vrot.slane %v824_v7, 4 }
  0xdf   : > { %v3109_v49 = vpop.permute.xlu0 %1024 }
  0xe0   : > { %v3111_v31 = vpop.permute.xlu1 %1075 }
  0xe1   : > { %952 = vrot.lane.b32.xlu0 %v2921_v55, %s2253_s20 }
  0xe2   : > { %970 = vrot.lane.b32.xlu1 %v3034_v34, %s2253_s20 }
  0xe3   : > { %v3121_v20 = vpop.permute.xlu0 %1026 }
  0xe4   : > { %v3123_v12 = vpop.permute.xlu1 %1077 }
  0xe5   : > { %1240 = vrot.lane.b32.xlu0 %v3117_v13, %s2258_s27 }
  0xe6   : > { %1048 = vrot.lane.b32.xlu1 %v2931_v50, %s2252_s19  ;;  %v796_v50 = vshll.u32 %v222_v6, 16 }
  0xe7   : > { %v3129_v55 = vpop.permute.xlu0 %1059 }
  0xe8   : > { %v3131_v42 = vpop.permute.xlu1 %1110  ;;  %v798_v33 = vrot.slane %v796_v50, 5 }
  0xe9   : > { %954 = vrot.lane.b32.xlu0 %v3073_v39, %s2253_s20 }
  0xea   : > { %1050 = vrot.lane.b32.xlu1 %v3093_v36, %s2252_s19  ;;  %v799_v63 = vsel %vm2371_vm5, %v794_v23, %v798_v33 }
  0xeb   : > { %v3138_v10 = vpop.permute.xlu0 %1061 }
  0xec   : > { %v3140_v5 = vpop.permute.xlu1 %1112 }
  0xed   : > { %1032 = vrot.lane.b32.xlu0 %v2966_v26, %s2252_s19  ;;  %v789_v26 = vsel %vm2371_vm5, %v784_v61, %v788_v56  ;;  %v3194_v61 = vld [vmem:[%s2294_s17 + $0xd4] sm:$0x1] }
  0xee   : > { %1083 = vrot.lane.b32.xlu1 %v2970_v57, %s2251_s18  ;;  %v3163_v46 = vcombine.low %v789_v26, %v799_v63  ;;  %v827_v26 = vor.u32 %v826_v54, %v822_v59  ;;  %v830_v63 = vshll.u32 %v3194_v61, 16  ;;  %v842_v54 = vrot.slane %v3194_v61, 5 }
  0xef   : > { %v3146_v17 = vpop.permute.xlu0 %1094 }
  0xf0   : > { %v1146_v28 = vpop.permute.xlu1 %1145  ;;  %v828_v58 = vrot.slane %v827_v26, 4 }
  0xf1   : > { %1034 = vrot.lane.b32.xlu0 %v3117_v13, %s2252_s19 }
  0xf2   : > { %1085 = vrot.lane.b32.xlu1 %v2055_v45, %s2251_s18 }
  0xf3   : > { %v3151_v35 = vpop.permute.xlu0 %1096 }
  0xf4   : > { %v3157_v25 = vpop.permute.xlu1 %1147 }
  0xf5   : > { %1067 = vrot.lane.b32.xlu0 %v3018_v2, %s2251_s18 }
  0xf6   : > { %1118 = vrot.lane.b32.xlu1 %v3034_v34, %s2254_s21  ;;  %v811_v34 = vshrl.u32 %v3168_v53, 16 }
  0xf7   : > { %v3165_v14 = vpop.permute.xlu0 %1129 }
  0xf8   : > { %v1181_v3 = vpop.permute.xlu1 %1180  ;;  %v813_v56 = vrot.slane %v811_v34, 4 }
  0xf9   : > { %1069 = vrot.lane.b32.xlu0 %v2895_v43, %s2251_s18 }
  0xfa   : > { %1120 = vrot.lane.b32.xlu1 %v3163_v46, %s2254_s21 }
  0xfb   : > { %v3179_v21 = vpop.permute.xlu0 %1131 }
  0xfc   : > { %v1183_v19 = vpop.permute.xlu1 %1182 }
  0xfd   : > { %1102 = vrot.lane.b32.xlu0 %v3073_v39, %s2254_s21  ;;  %v1295_v39 = vsel %vm1262_vm8, %v2447_v9, %v3020_v22  ;;  %v2058_v22 = vcombine.low %v3168_v53, %v3171_v62 }
  0xfe   : > { %1153 = vrot.lane.b32.xlu1 %v3093_v36, %s2255_s22  ;;  %v817_v36 = vor.u32 %v816_v0, %v813_v56  ;;  %v1333_v23 = vsel %vm1311_vm9, %v1295_v39, %v3086_v8 }
  0xff   : > { %v1165_v6 = vpop.permute.xlu0 %1164  ;;  %v1366_v40 = vsel %vm1344_vm10, %v1333_v23, %v3111_v31  ;;  %v832_v31 = vrot.slane %v830_v63, 5 }
 0x100   : > { %v1216_v50 = vpop.permute.xlu1 %1215  ;;  %v1399_v38 = vsel %vm1377_vm11, %v1366_v40, %v3131_v42  ;;  %v818_v8 = vrot.slane %v817_v36, 4 }
 0x101   : > { %1104 = vrot.lane.b32.xlu0 %v2459_v1, %s2254_s21  ;;  %v1432_v9 = vsel %vm1410_vm12, %v1399_v38, %v1146_v28  ;;  %v3517_v38 = vld [vmem:[#allocation2_spill] sm:$0xff] }
 0x102   : > { %1155 = vrot.lane.b32.xlu1 %v3191_v47, %s2255_s22  ;;  %v1465_v24 = vsel %vm1443_vm13, %v1432_v9, %v1181_v3  ;;  %v823_v3 = vsel %vm2371_vm5, %v818_v8, %v822_v59 }
 0x103   : > { %v3205_v33 = vpop.permute.xlu0 %1166  ;;  %v1498_v15 = vsel %vm1476_vm14, %v1465_v24, %v1216_v50 }
 0x104   : > { %v1218_v18 = vpop.permute.xlu1 %1217 }
 0x105   : > { %1137 = vrot.lane.b32.xlu0 %v3117_v13, %s2255_s22  ;;  %v1271_v13 = vsel %vm1262_vm8, %v2466_v37, %v3061_v48 }
 0x106   : > { %1188 = vrot.lane.b32.xlu1 %v2055_v45, %s2256_s23  ;;  %v1298_v45 = vsel %vm1262_vm8, %v2535_v32, %v3067_v29  ;;  %v1317_v28 = vsel %vm1311_vm9, %v1271_v13, %v3109_v49  ;;  %v833_v32 = vsel %vm2371_vm5, %v828_v58, %v832_v31  ;;  %v839_v29 = vrot.slane %v3171_v62, 5 }
 0x107   : > { %v1200_v34 = vpop.permute.xlu0 %1199  ;;  %v1335_v37 = vsel %vm1311_vm9, %v1298_v45, %v3099_v30  ;;  %v1350_v48 = vsel %vm1344_vm10, %v1317_v28, %v3129_v55 }
 0x108   : > { %v1251_v11 = vpop.permute.xlu1 %1250  ;;  %v1368_v49 = vsel %vm1344_vm10, %v1335_v37, %v3123_v12  ;;  %v1383_v52 = vsel %vm1377_vm11, %v1350_v48, %v3146_v17  ;;  %v2059_v12 = vcombine.low %v823_v3, %v833_v32  ;;  %v2006_v17 = vrot.slane %v3168_v53, 9  ;;  %v3518_v48 = vld [vmem:[#allocation5_spill] sm:$0xff] }
 0x109   : > { %1139 = vrot.lane.b32.xlu0 %v2357_v41, %s2255_s22  ;;  %v1531_v42 = vsel %vm1509_vm15, %v1498_v15, %v1251_v11  ;;  %v1401_v30 = vsel %vm1377_vm11, %v1368_v49, %v3140_v5  ;;  %v1416_v55 = vsel %vm1410_vm12, %v1383_v52, %v3165_v14  ;;  %v841_v14 = vrot.slane %v839_v29, 4 }
 0x10a   : > { %1190 = vrot.lane.b32.xlu1 %v2058_v22, %s2256_s23  ;;  %2189 = vmatprep.mubr.msk.bf16.mxu1 %vm1564_vm0, %v1531_v42  ;;  %v1434_v51 = vsel %vm1410_vm12, %v1401_v30, %v3157_v25  ;;  %v1449_v62 = vsel %vm1443_vm13, %v1416_v55, %v1165_v6  ;;  %v3515_v6 = vld [vmem:[#allocation4_spill] sm:$0xff] }
 0x10b   : > { %v1202_v7 = vpop.permute.xlu0 %1201  ;;  %v1467_v0 = vsel %vm1443_vm13, %v1434_v51, %v1183_v19  ;;  %v1482_v5 = vsel %vm1476_vm14, %v1449_v62, %v1200_v34 }
 0x10c   : > { %v3246_v56 = vpop.permute.xlu1 %964 }
 0x10d   : > { %1172 = vrot.lane.b32.xlu0 %v2895_v43, %s2256_s23  ;;  %v1500_v43 = vsel %vm1476_vm14, %v1467_v0, %v1218_v18  ;;  %v3516_v18 = vld [vmem:[#allocation3_spill] sm:$0xff]  ;;  %v3519_v0 = vld [vmem:[#allocation6_spill] sm:$0xff] }
 0x10e   : > { %1223 = vrot.lane.b32.xlu1 %v3163_v46, %s2257_s24  ;;  %v1274_v46 = vsel %vm1262_vm8, %v3515_v6, %v3097_v60  ;;  %v840_v60 = vsel %vm2326_vm4, %v2006_v17, %v839_v29 }
 0x10f   : > { %v1235_v59 = vpop.permute.xlu0 %1234  ;;  %v1319_v19 = vsel %vm1311_vm9, %v1274_v46, %v3121_v20 }
 0x110   : > { %v1515_v25 = vsel %vm1509_vm15, %v1482_v5, %v1235_v59  ;;  %v1253_v50 = vpop.permute.xlu1 %1252  ;;  %v1352_v61 = vsel %vm1344_vm10, %v1319_v19, %v3138_v10  ;;  %v3520_v59 = vld [vmem:[#allocation7_spill] sm:$0xff] }
 0x111   : > { %1174 = vrot.lane.b32.xlu0 %v2306_v4, %s2256_s23  ;;  %2173 = vmatprep.mubr.msk.bf16.mxu0 %vm1564_vm0, %v1515_v25  ;;  %v1533_v53 = vsel %vm1509_vm15, %v1500_v43, %v1253_v50  ;;  %v843_v4 = vsel %vm2326_vm4, %v841_v14, %v842_v54  ;;  %v1385_v36 = vsel %vm1377_vm11, %v1352_v61, %v3151_v35 }
 0x112   : > { %1225 = vrot.lane.b32.xlu1 %v2059_v12, %s2257_s24  ;;  %2190 = vmatmul.mubr.msk.bf16.gmra.mrb[4].mxu1 %vm1564_vm0, %v1533_v53  ;;  %v1418_v20 = vsel %vm1410_vm12, %v1385_v36, %v3179_v21  ;;  %v2060_v26 = vcombine.low %v840_v60, %v843_v4 }
 0x113   : > { %v949_v39 = vpop.permute.xlu0 %948  ;;  %v1451_v10 = vsel %vm1443_vm13, %v1418_v20, %v3205_v33 }
 0x114   : > { %v967_v23 = vpop.permute.xlu1 %966  ;;  %v1484_v16 = vsel %vm1476_vm14, %v1451_v10, %v1202_v7  ;;  %v1301_v7 = vsel %vm1262_vm8, %v3518_v48, %v3246_v56  ;;  %v1277_v5 = vsel %vm1262_vm8, %v3519_v0, %v949_v39 }
 0x115   : > { %1207 = vrot.lane.b32.xlu0 %v2459_v1, %s2257_s24  ;;  %v1304_v14 = vsel %vm1262_vm8, %v3520_v59, %v967_v23 }
 0x116   : > { %1258 = vrot.lane.b32.xlu1 %v3191_v47, %s2258_s27 }
 0x117   : > { %v1237_v63 = vpop.permute.xlu0 %1236 }
 0x118   : > { %v1517_v40 = vsel %vm1509_vm15, %v1484_v16, %v1237_v63  ;;  %v1045_v35 = vpop.permute.xlu1 %1044  ;;  %v3521_v16 = vld [vmem:[#allocation8_spill] sm:$0xff] }
 0x119   : > { %1209 = vrot.lane.b32.xlu0 %v3516_v18, %s2257_s24  ;;  %2174 = vmatmul.mubr.msk.bf16.gmra.mrb[4].mxu0 %vm1564_vm0, %v1517_v40  ;;  %v1337_v32 = vsel %vm1311_vm9, %v1301_v7, %v1045_v35 }
 0x11a   : > { %1260 = vrot.lane.b32.xlu1 %v2060_v26, %s2258_s27 }
 0x11b   : > { %v951_v1 = vpop.permute.xlu0 %950 }
 0x11c   : > { %v1047_v21 = vpop.permute.xlu1 %1046  ;;  %v1280_v63 = vsel %vm1262_vm8, %v3521_v16, %v951_v1 }
 0x11d   : > { %1242 = vrot.lane.b32.xlu0 %v2357_v41, %s2258_s27  ;;  %v1339_v43 = vsel %vm1311_vm9, %v1304_v14, %v1047_v21 }
 0x11f   : > { %v1029_v47 = vpop.permute.xlu0 %1028 }
 0x120   : > { %v1080_v33 = vpop.permute.xlu1 %1079  ;;  %v1321_v54 = vsel %vm1311_vm9, %v1277_v5, %v1029_v47 }
 0x121   : > { %1244 = vrot.lane.b32.xlu0 %v3517_v38, %s2258_s27  ;;  %v1370_v49 = vsel %vm1344_vm10, %v1337_v32, %v1080_v33 }
 0x123   : > { %v1031_v9 = vpop.permute.xlu0 %1030 }
 0x124   : > { %v1082_v22 = vpop.permute.xlu1 %1081  ;;  %v1323_v35 = vsel %vm1311_vm9, %v1280_v63, %v1031_v9 }
 0x125   : > { %v1372_v6 = vsel %vm1344_vm10, %v1339_v43, %v1082_v22 }
 0x127   : > { %v1064_v8 = vpop.permute.xlu0 %1063 }
 0x128   : > { %v1115_v24 = vpop.permute.xlu1 %1114  ;;  %v1354_v25 = vsel %vm1344_vm10, %v1321_v54, %v1064_v8 }
 0x129   : > { %v1403_v30 = vsel %vm1377_vm11, %v1370_v49, %v1115_v24 }
 0x12b   : > { %v1066_v34 = vpop.permute.xlu0 %1065 }
 0x12c   : > { %v1117_v58 = vpop.permute.xlu1 %1116  ;;  %v1356_v18 = vsel %vm1344_vm10, %v1323_v35, %v1066_v34 }
 0x12d   : > { %v1405_v19 = vsel %vm1377_vm11, %v1372_v6, %v1117_v58 }
 0x12f   : > { %v1099_v31 = vpop.permute.xlu0 %1098 }
 0x130   : > { %v1150_v15 = vpop.permute.xlu1 %1149  ;;  %v1387_v46 = vsel %vm1377_vm11, %v1354_v25, %v1099_v31 }
 0x131   : > { %v1436_v55 = vsel %vm1410_vm12, %v1403_v30, %v1150_v15 }
 0x133   : > { %v1101_v11 = vpop.permute.xlu0 %1100 }
 0x134   : > { %v1152_v13 = vpop.permute.xlu1 %1151  ;;  %v1389_v47 = vsel %vm1377_vm11, %v1356_v18, %v1101_v11 }
 0x135   : > { %v1438_v39 = vsel %vm1410_vm12, %v1405_v19, %v1152_v13 }
 0x137   : > { %v1134_v42 = vpop.permute.xlu0 %1133 }
 0x138   : > { %v1185_v45 = vpop.permute.xlu1 %1184  ;;  %v1420_v61 = vsel %vm1410_vm12, %v1387_v46, %v1134_v42 }
 0x139   : > { %v1469_v51 = vsel %vm1443_vm13, %v1436_v55, %v1185_v45 }
 0x13b   : > { %v1136_v28 = vpop.permute.xlu0 %1135 }
 0x13c   : > { %v1187_v3 = vpop.permute.xlu1 %1186  ;;  %v1422_v38 = vsel %vm1410_vm12, %v1389_v47, %v1136_v28 }
 0x13d   : > { %v1471_v4 = vsel %vm1443_vm13, %v1438_v39, %v1187_v3 }
 0x13f   : > { %v1169_v41 = vpop.permute.xlu0 %1168 }
 0x140   : > { %v1220_v37 = vpop.permute.xlu1 %1219  ;;  %v1453_v60 = vsel %vm1443_vm13, %v1420_v61, %v1169_v41 }
 0x141   : > { %v1502_v12 = vsel %vm1476_vm14, %v1469_v51, %v1220_v37 }
 0x143   : > { %v1171_v29 = vpop.permute.xlu0 %1170 }
 0x144   : > { %v1222_v52 = vpop.permute.xlu1 %1221  ;;  %v1455_v22 = vsel %vm1443_vm13, %v1422_v38, %v1171_v29 }
 0x145   : > { %v1504_v20 = vsel %vm1476_vm14, %v1471_v4, %v1222_v52 }
 0x147   : > { %v1204_v62 = vpop.permute.xlu0 %1203 }
 0x148   : > { %v1255_v17 = vpop.permute.xlu1 %1254  ;;  %v1486_v36 = vsel %vm1476_vm14, %v1453_v60, %v1204_v62 }
 0x149   : > { %v1535_v56 = vsel %vm1509_vm15, %v1502_v12, %v1255_v17 }
 0x14a   : > { %2193 = vmatprep.mubr.msk.bf16.mxu1 %vm1564_vm0, %v1535_v56 }
 0x14b   : > { %v1206_v50 = vpop.permute.xlu0 %1205 }
 0x14c   : > { %v969_v53 = vpop.permute.xlu1 %968  ;;  %v1488_v1 = vsel %vm1476_vm14, %v1455_v22, %v1206_v50 }
 0x14d   : > { %v1307_v51 = vsel %vm1262_vm8, %v2847_v44, %v969_v53 }
 0x14f   : > { %v1239_v23 = vpop.permute.xlu0 %1238 }
 0x150   : > { %v1519_v10 = vsel %vm1509_vm15, %v1486_v36, %v1239_v23  ;;  %v1257_v26 = vpop.permute.xlu1 %1256 }
 0x151   : > { %2177 = vmatprep.mubr.msk.bf16.mxu0 %vm1564_vm0, %v1519_v10  ;;  %v1537_v40 = vsel %vm1509_vm15, %v1504_v20, %v1257_v26 }
 0x152   : > { %2194 = vmatmul.mubr.msk.bf16.gmra.mrb[8].mxu1 %vm1564_vm0, %v1537_v40 }
 0x153   : > { %v953_v21 = vpop.permute.xlu0 %952 }
 0x154   : > { %v971_v33 = vpop.permute.xlu1 %970  ;;  %v1283_v6 = vsel %vm1262_vm8, %v2876_v27, %v953_v21 }
 0x155   : > { %v1310_v56 = vsel %vm1262_vm8, %v2970_v57, %v971_v33 }
 0x157   : > { %v1241_v8 = vpop.permute.xlu0 %1240 }
 0x158   : > { %v1521_v24 = vsel %vm1509_vm15, %v1488_v1, %v1241_v8  ;;  %v1049_v58 = vpop.permute.xlu1 %1048  ;;  %v3386_v1 = vld [vmem:[%s3495_s2] ss:$0 sm:$0xff] }
 0x159   : > { %2178 = vmatmul.mubr.msk.bf16.gmra.mrb[8].mxu0 %vm1564_vm0, %v1521_v24  ;;  %v1341_v62 = vsel %vm1311_vm9, %v1307_v51, %v1049_v58 }
 0x15b   : > { %v955_v9 = vpop.permute.xlu0 %954 }
 0x15c   : > { %v1051_v31 = vpop.permute.xlu1 %1050  ;;  %v1286_v23 = vsel %vm1262_vm8, %v3018_v2, %v955_v9 }
 0x15d   : > { %v1343_v14 = vsel %vm1311_vm9, %v1310_v56, %v1051_v31 }
 0x15f   : > { %v1033_v15 = vpop.permute.xlu0 %1032 }
 0x160   : > { %v1084_v34 = vpop.permute.xlu1 %1083  ;;  %v1325_v57 = vsel %vm1311_vm9, %v1283_v6, %v1033_v15 }
 0x161   : > { %v1374_v17 = vsel %vm1344_vm10, %v1341_v62, %v1084_v34 }
 0x163   : > { %v1035_v13 = vpop.permute.xlu0 %1034 }
 0x164   : > { %v1086_v42 = vpop.permute.xlu1 %1085  ;;  %v1327_v26 = vsel %vm1311_vm9, %v1286_v23, %v1035_v13 }
 0x165   : > { %v1376_v44 = vsel %vm1344_vm10, %v1343_v14, %v1086_v42 }
 0x167   : > { %v1068_v11 = vpop.permute.xlu0 %1067 }
 0x168   : > { %v1119_v45 = vpop.permute.xlu1 %1118  ;;  %v1358_v61 = vsel %vm1344_vm10, %v1325_v57, %v1068_v11 }
 0x169   : > { %v1407_v5 = vsel %vm1377_vm11, %v1374_v17, %v1119_v45 }
 0x16b   : > { %v1070_v3 = vpop.permute.xlu0 %1069 }
 0x16c   : > { %v1121_v28 = vpop.permute.xlu1 %1120  ;;  %v1360_v63 = vsel %vm1344_vm10, %v1327_v26, %v1070_v3 }
 0x16d   : > { %v1409_v46 = vsel %vm1377_vm11, %v1376_v44, %v1121_v28 }
 0x16f   : > { %v1103_v41 = vpop.permute.xlu0 %1102 }
 0x170   : > { %v1154_v37 = vpop.permute.xlu1 %1153  ;;  %v1391_v4 = vsel %vm1377_vm11, %v1358_v61, %v1103_v41 }
 0x171   : > { %v1440_v59 = vsel %vm1410_vm12, %v1407_v5, %v1154_v37 }
 0x173   : > { %v1105_v48 = vpop.permute.xlu0 %1104 }
 0x174   : > { %v1156_v7 = vpop.permute.xlu1 %1155  ;;  %v1393_v18 = vsel %vm1377_vm11, %v1360_v63, %v1105_v48 }
 0x175   : > { %v1442_v19 = vsel %vm1410_vm12, %v1409_v46, %v1156_v7 }
 0x177   : > { %v1138_v32 = vpop.permute.xlu0 %1137 }
 0x178   : > { %v1189_v29 = vpop.permute.xlu1 %1188  ;;  %v1424_v20 = vsel %vm1410_vm12, %v1391_v4, %v1138_v32 }
 0x179   : > { %v1473_v54 = vsel %vm1443_vm13, %v1440_v59, %v1189_v29 }
 0x17b   : > { %v1140_v49 = vpop.permute.xlu0 %1139 }
 0x17c   : > { %v1191_v52 = vpop.permute.xlu1 %1190  ;;  %v1426_v21 = vsel %vm1410_vm12, %v1393_v18, %v1140_v49 }
 0x17d   : > { %v1475_v39 = vsel %vm1443_vm13, %v1442_v19, %v1191_v52 }
 0x17f   : > { %v1173_v30 = vpop.permute.xlu0 %1172 }
 0x180   : > { %v1224_v55 = vpop.permute.xlu1 %1223  ;;  %v1457_v16 = vsel %vm1443_vm13, %v1424_v20, %v1173_v30 }
 0x181   : > { %v1506_v25 = vsel %vm1476_vm14, %v1473_v54, %v1224_v55 }
 0x183   : > { %v1175_v12 = vpop.permute.xlu0 %1174 }
 0x184   : > { %v1226_v0 = vpop.permute.xlu1 %1225  ;;  %v1459_v47 = vsel %vm1443_vm13, %v1426_v21, %v1175_v12 }
 0x185   : > { %v1508_v36 = vsel %vm1476_vm14, %v1475_v39, %v1226_v0 }
 0x187   : > { %v1208_v43 = vpop.permute.xlu0 %1207 }
 0x188   : > { %v1259_v50 = vpop.permute.xlu1 %1258  ;;  %v1490_v40 = vsel %vm1476_vm14, %v1457_v16, %v1208_v43 }
 0x189   : > { %v1539_v53 = vsel %vm1509_vm15, %v1506_v25, %v1259_v50 }
 0x18a   : > { %2197 = vmatprep.mubr.msk.bf16.mxu1 %vm1564_vm0, %v1539_v53 }
 0x18b   : > { %v1210_v60 = vpop.permute.xlu0 %1209 }
 0x18c   : > { %v1261_v27 = vpop.permute.xlu1 %1260  ;;  %v1492_v33 = vsel %vm1476_vm14, %v1459_v47, %v1210_v60 }
 0x18d   : > { %v1541_v10 = vsel %vm1509_vm15, %v1508_v36, %v1261_v27 }
 0x18e   : > { %2198 = vmatmul.mubr.msk.bf16.gmra.mrb[12].mxu1 %vm1564_vm0, %v1541_v10 }
 0x18f   : > { %v1243_v35 = vpop.permute.xlu0 %1242 }
 0x190   : > { %v1523_v2 = vsel %vm1509_vm15, %v1490_v40, %v1243_v35 }
 0x191   : > { %2181 = vmatprep.mubr.msk.bf16.mxu0 %vm1564_vm0, %v1523_v2 }
 0x193   : > { %v1245_v38 = vpop.permute.xlu0 %1244 }
 0x194   : > { %v1525_v22 = vsel %vm1509_vm15, %v1492_v33, %v1245_v38 }
 0x195   : > { %2182 = vmatmul.mubr.msk.bf16.gmra.mrb[12].mxu0 %vm1564_vm0, %v1525_v22 }
 0x1a5   : > { %v2187_v8 = vpop.f32.mrb[0].mxu1 }
 0x1a6   : > { %v1711_v24 = vadd.f32 %v2187_v8, %v3386_v1  ;;  %v1702_v58 = vpop.f32.mrb[1].mxu1 }
 0x1a7   : > { %v1703_v9 = vadd.f32 %v3386_v1, %v1702_v58  ;;  %v2188_v31 = vpop.f32.mrb[2].mxu1 }
 0x1a8   : > { %v2133_v15 = vpack.c.bf16 %v1711_v24, %v1711_v24  ;;  %v1714_v34 = vadd.f32 %v2188_v31, %v3386_v1  ;;  %v1705_v13 = vpop.f32.mrb[3].mxu1 }
 0x1a9   : > { %v2131_v42 = vpack.c.bf16 %v1703_v9, %v1703_v9  ;;  %v1706_v11 = vadd.f32 %v3386_v1, %v1705_v13 }
 0x1aa   : > { %1912 = vst.msk [vmem:[%s3393_s8 + $0x48] sm:$0xf] %vm1893_vm1, %v2133_v15  ;;  %v2134_v45 = vpack.c.bf16 %v1714_v34, %v1714_v34 }
 0x1ab   : > { %1910 = vst.msk [vmem:[%s3393_s8 + $0x40] sm:$0xf] %vm1893_vm1, %v2131_v42  ;;  %v2132_v3 = vpack.c.bf16 %v1706_v11, %v1706_v11 }
 0x1ac   : > { %v2171_v28 = vpop.f32.mrb[0].mxu0  ;;  %1913 = vst.msk [vmem:[%s3393_s8 + $0x4c] sm:$0xf] %vm1893_vm1, %v2134_v45 }
 0x1ad   : > { %v1647_v41 = vadd.f32 %v2171_v28, %v3386_v1  ;;  %v1638_v37 = vpop.f32.mrb[1].mxu0  ;;  %1911 = vst.msk [vmem:[%s3393_s8 + $0x44] sm:$0xf] %vm1893_vm1, %v2132_v3 }
 0x1ae   : > { %v1639_v48 = vadd.f32 %v3386_v1, %v1638_v37  ;;  %v2172_v7 = vpop.f32.mrb[2].mxu0 }
 0x1af   : > { %v2117_v32 = vpack.c.bf16 %v1647_v41, %v1647_v41  ;;  %v1650_v29 = vadd.f32 %v2172_v7, %v3386_v1  ;;  %v1641_v49 = vpop.f32.mrb[3].mxu0 }
 0x1b0   : > { %v2115_v52 = vpack.c.bf16 %v1639_v48, %v1639_v48  ;;  %v1642_v30 = vadd.f32 %v3386_v1, %v1641_v49 }
 0x1b1   : > { %1896 = vst.msk [vmem:[%s3393_s8 + $0x8] sm:$0xf] %vm1893_vm1, %v2117_v32  ;;  %v2118_v55 = vpack.c.bf16 %v1650_v29, %v1650_v29 }
 0x1b2   : > { %1894 = vst.msk [vmem:[%s3393_s8] sm:$0xf] %vm1893_vm1, %v2115_v52  ;;  %v2116_v51 = vpack.c.bf16 %v1642_v30, %v1642_v30 }
 0x1b3   : > { %1897 = vst.msk [vmem:[%s3393_s8 + $0xc] sm:$0xf] %vm1893_vm1, %v2118_v55 }
 0x1b4   : > { %1895 = vst.msk [vmem:[%s3393_s8 + $0x4] sm:$0xf] %vm1893_vm1, %v2116_v51 }
 0x1e5   : > { %v2191_v62 = vpop.f32.mrb[4].mxu1 }
 0x1e6   : > { %v1727_v12 = vadd.f32 %v2191_v62, %v3386_v1  ;;  %v1718_v17 = vpop.f32.mrb[5].mxu1 }
 0x1e7   : > { %v1719_v0 = vadd.f32 %v3386_v1, %v1718_v17  ;;  %v2192_v5 = vpop.f32.mrb[6].mxu1 }
 0x1e8   : > { %v2137_v56 = vpack.c.bf16 %v1727_v12, %v1727_v12  ;;  %v1730_v59 = vadd.f32 %v2192_v5, %v3386_v1  ;;  %v1721_v14 = vpop.f32.mrb[7].mxu1 }
 0x1e9   : > { %v2135_v54 = vpack.c.bf16 %v1719_v0, %v1719_v0  ;;  %v1722_v43 = vadd.f32 %v3386_v1, %v1721_v14 }
 0x1ea   : > { %1916 = vst.msk [vmem:[%s3393_s8 + $0x58] sm:$0xf] %vm1893_vm1, %v2137_v56  ;;  %v2138_v44 = vpack.c.bf16 %v1730_v59, %v1730_v59 }
 0x1eb   : > { %1914 = vst.msk [vmem:[%s3393_s8 + $0x50] sm:$0xf] %vm1893_vm1, %v2135_v54  ;;  %v2136_v25 = vpack.c.bf16 %v1722_v43, %v1722_v43 }
 0x1ec   : > { %v2175_v50 = vpop.f32.mrb[4].mxu0  ;;  %1917 = vst.msk [vmem:[%s3393_s8 + $0x5c] sm:$0xf] %vm1893_vm1, %v2138_v44 }
 0x1ed   : > { %v1663_v6 = vadd.f32 %v2175_v50, %v3386_v1  ;;  %v1654_v46 = vpop.f32.mrb[5].mxu0  ;;  %1915 = vst.msk [vmem:[%s3393_s8 + $0x54] sm:$0xf] %vm1893_vm1, %v2136_v25 }
 0x1ee   : > { %v1655_v53 = vadd.f32 %v3386_v1, %v1654_v46  ;;  %v2176_v57 = vpop.f32.mrb[6].mxu0 }
 0x1ef   : > { %v2121_v19 = vpack.c.bf16 %v1663_v6, %v1663_v6  ;;  %v1666_v61 = vadd.f32 %v2176_v57, %v3386_v1  ;;  %v1657_v39 = vpop.f32.mrb[7].mxu0 }
 0x1f0   : > { %v2119_v60 = vpack.c.bf16 %v1655_v53, %v1655_v53  ;;  %v1658_v4 = vadd.f32 %v3386_v1, %v1657_v39 }
 0x1f1   : > { %1900 = vst.msk [vmem:[%s3393_s8 + $0x18] sm:$0xf] %vm1893_vm1, %v2121_v19  ;;  %v2122_v36 = vpack.c.bf16 %v1666_v61, %v1666_v61 }
 0x1f2   : > { %1898 = vst.msk [vmem:[%s3393_s8 + $0x10] sm:$0xf] %vm1893_vm1, %v2119_v60  ;;  %v2120_v27 = vpack.c.bf16 %v1658_v4, %v1658_v4 }
 0x1f3   : > { %1901 = vst.msk [vmem:[%s3393_s8 + $0x1c] sm:$0xf] %vm1893_vm1, %v2122_v36 }
 0x1f4   : > { %1899 = vst.msk [vmem:[%s3393_s8 + $0x14] sm:$0xf] %vm1893_vm1, %v2120_v27 }
 0x225   : > { %v2195_v23 = vpop.f32.mrb[8].mxu1 }
 0x226   : > { %v1743_v20 = vadd.f32 %v2195_v23, %v3386_v1  ;;  %v1734_v10 = vpop.f32.mrb[9].mxu1 }
 0x227   : > { %v1735_v26 = vadd.f32 %v3386_v1, %v1734_v10  ;;  %v2196_v16 = vpop.f32.mrb[10].mxu1 }
 0x228   : > { %v2141_v63 = vpack.c.bf16 %v1743_v20, %v1743_v20  ;;  %v1746_v40 = vadd.f32 %v2196_v16, %v3386_v1  ;;  %v1737_v35 = vpop.f32.mrb[11].mxu1 }
 0x229   : > { %v2139_v18 = vpack.c.bf16 %v1735_v26, %v1735_v26  ;;  %v1738_v2 = vadd.f32 %v3386_v1, %v1737_v35 }
 0x22a   : > { %1920 = vst.msk [vmem:[%s3393_s8 + $0x68] sm:$0xf] %vm1893_vm1, %v2141_v63  ;;  %v2142_v21 = vpack.c.bf16 %v1746_v40, %v1746_v40 }
 0x22b   : > { %1918 = vst.msk [vmem:[%s3393_s8 + $0x60] sm:$0xf] %vm1893_vm1, %v2139_v18  ;;  %v2140_v47 = vpack.c.bf16 %v1738_v2, %v1738_v2 }
 0x22c   : > { %v2179_v33 = vpop.f32.mrb[8].mxu0  ;;  %1921 = vst.msk [vmem:[%s3393_s8 + $0x6c] sm:$0xf] %vm1893_vm1, %v2142_v21 }
 0x22d   : > { %v1679_v38 = vadd.f32 %v2179_v33, %v3386_v1  ;;  %v1670_v22 = vpop.f32.mrb[9].mxu0  ;;  %1919 = vst.msk [vmem:[%s3393_s8 + $0x64] sm:$0xf] %vm1893_vm1, %v2140_v47 }
 0x22e   : > { %v1671_v8 = vadd.f32 %v3386_v1, %v1670_v22  ;;  %v2180_v24 = vpop.f32.mrb[10].mxu0 }
 0x22f   : > { %v2125_v58 = vpack.c.bf16 %v1679_v38, %v1679_v38  ;;  %v1682_v9 = vadd.f32 %v2180_v24, %v3386_v1  ;;  %v1673_v31 = vpop.f32.mrb[11].mxu0 }
 0x230   : > { %v2123_v15 = vpack.c.bf16 %v1671_v8, %v1671_v8  ;;  %v1674_v34 = vadd.f32 %v3386_v1, %v1673_v31 }
 0x231   : > { %1904 = vst.msk [vmem:[%s3393_s8 + $0x28] sm:$0xf] %vm1893_vm1, %v2125_v58  ;;  %v2126_v13 = vpack.c.bf16 %v1682_v9, %v1682_v9 }
 0x232   : > { %1902 = vst.msk [vmem:[%s3393_s8 + $0x20] sm:$0xf] %vm1893_vm1, %v2123_v15  ;;  %v2124_v42 = vpack.c.bf16 %v1674_v34, %v1674_v34 }
 0x233   : > { %1905 = vst.msk [vmem:[%s3393_s8 + $0x2c] sm:$0xf] %vm1893_vm1, %v2126_v13 }
 0x234   : > { %1903 = vst.msk [vmem:[%s3393_s8 + $0x24] sm:$0xf] %vm1893_vm1, %v2124_v42 }
 0x261   : > { %v2199_v11 = vpop.f32.mrb[12].mxu1 }
 0x262   : > { %v1759_v45 = vadd.f32 %v2199_v11, %v3386_v1  ;;  %v1750_v3 = vpop.f32.mrb[13].mxu1 }
 0x263   : > { %v1751_v28 = vadd.f32 %v3386_v1, %v1750_v3  ;;  %v2200_v41 = vpop.f32.mrb[14].mxu1 }
 0x264   : > { %v2145_v37 = vpack.c.bf16 %v1759_v45, %v1759_v45  ;;  %v1762_v48 = vadd.f32 %v2200_v41, %v3386_v1  ;;  %v1753_v7 = vpop.f32.mrb[15].mxu1 }
 0x265   : > { %v2143_v32 = vpack.c.bf16 %v1751_v28, %v1751_v28  ;;  %v1754_v29 = vadd.f32 %v3386_v1, %v1753_v7 }
 0x266   : > { %1924 = vst.msk [vmem:[%s3393_s8 + $0x78] sm:$0xf] %vm1893_vm1, %v2145_v37  ;;  %v2146_v49 = vpack.c.bf16 %v1762_v48, %v1762_v48 }
 0x267   : > { %1922 = vst.msk [vmem:[%s3393_s8 + $0x70] sm:$0xf] %vm1893_vm1, %v2143_v32  ;;  %v2144_v52 = vpack.c.bf16 %v1754_v29, %v1754_v29 }
 0x268   : > { %v2183_v30 = vpop.f32.mrb[12].mxu0  ;;  %1925 = vst.msk [vmem:[%s3393_s8 + $0x7c] sm:$0xf] %vm1893_vm1, %v2146_v49 }
 0x269   : > { %v1695_v55 = vadd.f32 %v2183_v30, %v3386_v1  ;;  %v1686_v51 = vpop.f32.mrb[13].mxu0  ;;  %1923 = vst.msk [vmem:[%s3393_s8 + $0x74] sm:$0xf] %vm1893_vm1, %v2144_v52 }
 0x26a   : > { %v1687_v62 = vadd.f32 %v3386_v1, %v1686_v51  ;;  %v2184_v12 = vpop.f32.mrb[14].mxu0 }
 0x26b   : > { %v2129_v17 = vpack.c.bf16 %v1695_v55, %v1695_v55  ;;  %v1698_v0 = vadd.f32 %v2184_v12, %v3386_v1  ;;  %v1689_v5 = vpop.f32.mrb[15].mxu0 }
 0x26c   : > { %v2127_v56 = vpack.c.bf16 %v1687_v62, %v1687_v62  ;;  %v1690_v59 = vadd.f32 %v3386_v1, %v1689_v5 }
 0x26d   : > { %1908 = vst.msk [vmem:[%s3393_s8 + $0x38] sm:$0xf] %vm1893_vm1, %v2129_v17  ;;  %v2130_v14 = vpack.c.bf16 %v1698_v0, %v1698_v0 }
 0x26e   : > { %1906 = vst.msk [vmem:[%s3393_s8 + $0x30] sm:$0xf] %vm1893_vm1, %v2127_v56  ;;  %v2128_v54 = vpack.c.bf16 %v1690_v59, %v1690_v59 }
 0x26f   : > { %1909 = vst.msk [vmem:[%s3393_s8 + $0x3c] sm:$0xf] %vm1893_vm1, %v2130_v14 }
 0x270   : > { %1907 = vst.msk [vmem:[%s3393_s8 + $0x34] sm:$0xf] %vm1893_vm1, %v2128_v54 }
 0x271 PF: > { %s13_s12 = sadd.s32 1, %s2249_s12  }
 0x272   : > { %p10_p4 = scmp.ge.s32.totalorder %s13_s12, 4  }
 0x274   :  { %12 = sbr.rel (!%p10_p4) target bundleno = 1 (0x1), region = 62 }

</bundles_post_ra>
